<compile_context>
chip_gen: v5e
topology: v5e:2x2
jax: 0.10.0
libtpu: 0.0.40
codegen_flags: <defaults>
</compile_context>

<pallas_src>
import jax
import jax.numpy as jnp
import numpy as np
from jax.experimental import pallas as pl
from jax.experimental.pallas import tpu as pltpu

LEAK = 0.2
assert 0.0 < LEAK < 1.0  # required for the max-based leaky-ReLU rewrite below


def _cdiv(a, b):
    return -(-a // b)


def _round_up(x, m):
    return _cdiv(x, m) * m


def _leaky(x):
    # Exact rewrite of where(x > 0, x, LEAK*x) because 0 < LEAK < 1.
    return jnp.maximum(x, LEAK * x)


def _pair_factor():
    """Stage-2 tap pairing: 2 on 256-wide-MXU chips (v6e/v7x), else 1."""
    try:
        kind = jax.devices()[0].device_kind.lower()
    except Exception:
        return 1
    return 2 if ("v6" in kind or "v7" in kind) else 1


def _decoder_kernel(x_ref, w1_ref, b1_ref, w2_ref, b2_ref, w3_ref, b3_ref,
                    w4_ref, b4_ref, o_ref, acc_ref):
    """One (pixel-tile, conv4-tap) grid step of the fused decoder.

    Grid = (pixel tiles [parallel], s = conv4 tap kh4*2+kw4 [arbitrary]).
    x_ref  : (4, tm)  f32   rows = conv3 tap t = kh3*2+kw3 for this s-tap,
                            columns = final output pixels.
    w1_ref : (128, 1)       f32  folded (upsample+conv1) weight column
    b1_ref : (128, 1)       f32
    w2_ref : (P*128, P*128) bf16 block-diag(P copies of folded conv2 weight)
    b2_ref : (P*128, 1)     f32
    w3_ref : (G, 64, P*128) bf16 conv3 weights, P taps concatenated along cin
    b3_ref : (64, 1)        f32
    w4_ref : (64, 1)        f32  conv4 weight column of this s-tap
    b4_ref : (1, 1)         f32  SMEM scalar
    o_ref  : (1, tm)        f32  lane-dense tanh output row (written at last s)
    acc_ref: (1, tm)        f32  VMEM scratch, conv4 accumulator across s
    """
    s = pl.program_id(1)
    tm = o_ref.shape[1]
    c1 = w1_ref.shape[0]
    c3 = b3_ref.shape[0]
    G = w3_ref.shape[0]                 # tap groups per s (== 4 // P)
    P = w2_ref.shape[0] // c1           # conv3 taps fused per stage-2 matmul

    # Hoisted once per grid step (weights are VMEM-resident).
    w1 = w1_ref[...]
    b1 = b1_ref[...]
    w2 = w2_ref[...]
    b2 = b2_ref[...]
    b3 = b3_ref[...]
    w4 = w4_ref[...]
    b4 = b4_ref[0, 0]

    @pl.when(s == 0)
    def _():
        acc_ref[...] = jnp.zeros_like(acc_ref)

    acc3 = jnp.zeros((c3, tm), jnp.float32)
    for g in range(G):
        # Stage 1 (folded upsample+conv1): VPU outer product per tap; P taps
        # stacked along sublanes so they share one MXU pass in stage 2.
        parts = []
        for p in range(P):
            t = g * P + p
            xr = x_ref[t:t + 1, :]                                   # (1, tm)
            parts.append(_leaky(w1 * xr + b1).astype(jnp.bfloat16))  # (128, tm)
        h1 = parts[0] if P == 1 else jnp.concatenate(parts, axis=0)  # (P*128, tm)
        # Stage 2 (folded upsample+conv2): block-diag weight -> K = M = P*128.
        h2 = _leaky(jnp.dot(w2, h1, preferred_element_type=jnp.float32) + b2)
        # Stage 3 (conv3, taps of this group): taps K-concatenated along cin.
        acc3 = acc3 + jnp.dot(w3_ref[g], h2.astype(jnp.bfloat16),
                              preferred_element_type=jnp.float32)
    h3 = _leaky(acc3 + b3)                                           # (64, tm)
    # Stage 4 (conv4, tap s): 64 -> 1 as VPU multiply + sublane reduce
    # (keeps the MXU free and the result lane-dense).
    acc_ref[...] += jnp.sum(h3 * w4, axis=0, keepdims=True)

    @pl.when(s == pl.num_programs(1) - 1)
    def _():
        o_ref[...] = jnp.tanh(acc_ref[...] + b4)                     # EUP tanh


def conv_decoder_forward(x, params, *, tile=2048, pair_taps=None):
    """ConvDecoder forward.  x: (B, 1, H, W) float32 NCHW, H % 4 == W % 4 == 0."""
    w1, b1, w2, b2, w3, b3, w4, b4 = params
    B, C, H, W = x.shape
    assert C == 1 and H % 4 == 0 and W % 4 == 0
    assert tile % 128 == 0
    Ho, Wo = H // 4, W // 4
    M = B * Ho * Wo
    c1 = w1.shape[0]      # 128
    c3 = w3.shape[0]      # 64

    P = _pair_factor() if pair_taps is None else pair_taps
    assert P in (1, 2)
    G = 4 // P

    # ---- fold Upsample(nearest x2) into the k=2/s=2 convs (exact) ----
    w1e = jnp.sum(w1, axis=(2, 3)).reshape(c1, 1).astype(jnp.float32)
    w2e = jnp.sum(w2, axis=(2, 3)).astype(jnp.bfloat16)               # (128, 128)
    b1c = b1.reshape(c1, 1).astype(jnp.float32)
    b2c = b2.reshape(c1, 1).astype(jnp.float32)
    b3c = b3.reshape(c3, 1).astype(jnp.float32)
    b4c = b4.reshape(1, 1).astype(jnp.float32)

    # Stage-2 weight: block-diag of P copies (zero off-diag blocks are exact).
    if P == 1:
        w2p, b2p = w2e, b2c
    else:
        z = jnp.zeros((c1, c1), jnp.bfloat16)
        w2p = jnp.block([[w2e, z], [z, w2e]])                         # (256, 256)
        b2p = jnp.concatenate([b2c, b2c], axis=0)                     # (256, 1)

    # Stage-3 weights: per-tap t = kh3*2+kw3, P taps concatenated along cin.
    w3t = jnp.transpose(w3, (2, 3, 0, 1)).reshape(4, c3, c1)          # [t][cout,cin]
    w3p = (w3t.reshape(G, P, c3, c1).transpose(0, 2, 1, 3)
               .reshape(G, c3, P * c1).astype(jnp.bfloat16))
    # Stage-4 weight columns, per tap s = kh4*2+kw4.
    w4s = jnp.transpose(w4[0], (1, 2, 0)).reshape(4, c3, 1).astype(jnp.float32)

    # ---- rearrange input pixels (tiny: 1 channel) ----
    # full-res (i, j) = (4*i4 + 2*kh4 + kh3, 4*j4 + 2*kw4 + kw3)
    xs = x.reshape(B, Ho, 2, 2, Wo, 2, 2)             # (b, i4, kh4, kh3, j4, kw4, kw3)
    xs = jnp.transpose(xs, (2, 5, 3, 6, 0, 1, 4))     # (kh4, kw4, kh3, kw3, b, i4, j4)
    x2d = xs.reshape(16, M).astype(jnp.float32)

    # Tile choice: spread pixels evenly over tiles (minimal tail padding) and
    # keep the "parallel" pixel-tile count even when possible so it splits
    # across both TensorCores on v7x.
    n_tiles = _cdiv(M, tile)
    if M >= 256 and n_tiles % 2 == 1:
        n_tiles += 1
    tm = min(tile, _round_up(_cdiv(M, n_tiles), 128))
    m_pad = _round_up(M, tm)
    grid_m = m_pad // tm
    if m_pad != M:
        x2d = jnp.pad(x2d, ((0, 0), (0, m_pad - M)))
    x3d = x2d.reshape(4, 4, m_pad)                    # (s, t, pixel)

    out_row = pl.pallas_call(
        _decoder_kernel,
        out_shape=jax.ShapeDtypeStruct((1, m_pad), jnp.float32),
        grid=(grid_m, 4),
        in_specs=[
            pl.BlockSpec((None, 4, tm), lambda i, s: (s, 0, i)),      # taps of this s
            pl.BlockSpec((c1, 1), lambda i, s: (0, 0)),               # VMEM-resident
            pl.BlockSpec((c1, 1), lambda i, s: (0, 0)),
            pl.BlockSpec((P * c1, P * c1), lambda i, s: (0, 0)),
            pl.BlockSpec((P * c1, 1), lambda i, s: (0, 0)),
            pl.BlockSpec((G, c3, P * c1), lambda i, s: (0, 0, 0)),
            pl.BlockSpec((c3, 1), lambda i, s: (0, 0)),
            pl.BlockSpec((None, c3, 1), lambda i, s: (s, 0, 0)),      # conv4 tap column
            pl.BlockSpec(memory_space=pltpu.MemorySpace.SMEM),        # b4 scalar
        ],
        out_specs=pl.BlockSpec((1, tm), lambda i, s: (0, i)),         # lane-dense output
        scratch_shapes=[pltpu.VMEM((1, tm), jnp.float32)],            # conv4 accumulator
        compiler_params=pltpu.CompilerParams(
            dimension_semantics=("parallel", "arbitrary"),            # megacore on v7x
            vmem_limit_bytes=32 * 1024 * 1024),
    )(x3d, w1e, b1c, w2p, b2p, w3p, b3c, w4s, b4c)

    return out_row[0, :M].reshape(B, Ho, Wo)[:, None, :, :]


def conv_decoder_reference(x, params):
    """Plain-JAX reference matching the PyTorch module (eval mode), f32."""
    w1, b1, w2, b2, w3, b3, w4, b4 = params

    def up2(y):  # nearest x2, NCHW
        return jnp.repeat(jnp.repeat(y, 2, axis=2), 2, axis=3)

    def conv(y, w, b):
        o = jax.lax.conv_general_dilated(
            y, w, window_strides=(2, 2), padding="VALID",
            dimension_numbers=("NCHW", "OIHW", "NCHW"),
            precision=jax.lax.Precision.HIGHEST)
        return o + b.reshape(1, -1, 1, 1)

    def lrelu(v):
        return jnp.where(v > 0, v, LEAK * v)

    h = lrelu(conv(up2(x), w1, b1))
    h = lrelu(conv(up2(h), w2, b2))
    h = lrelu(conv(h, w3, b3))
    return jnp.tanh(conv(h, w4, b4))


if __name__ == "__main__":
    key = jax.random.PRNGKey(0)
    B, H, W = 2, 16, 16
    ks = jax.random.split(key, 9)

    def u(k, shape, fan_in):
        bound = 1.0 / np.sqrt(fan_in)
        return jax.random.uniform(k, shape, jnp.float32, -bound, bound)

    params = (
        u(ks[0], (128, 1, 2, 2), 1 * 2 * 2),      # conv1 w
        u(ks[1], (128,), 1 * 2 * 2),              # conv1 b
        u(ks[2], (128, 128, 2, 2), 128 * 2 * 2),  # conv2 w
        u(ks[3], (128,), 128 * 2 * 2),            # conv2 b
        u(ks[4], (64, 128, 2, 2), 128 * 2 * 2),   # conv3 w
        u(ks[5], (64,), 128 * 2 * 2),             # conv3 b
        u(ks[6], (1, 64, 2, 2), 64 * 2 * 2),      # conv4 w
        u(ks[7], (1,), 64 * 2 * 2),               # conv4 b
    )
    x = jax.random.normal(ks[8], (B, 1, H, W), jnp.float32)

    out = jax.jit(conv_decoder_forward)(x, params)
    out = jax.block_until_ready(out)

    ref = conv_decoder_reference(x, params)
    assert out.shape == (B, 1, H // 4, W // 4)
    np.testing.assert_allclose(np.asarray(out), np.asarray(ref), atol=5e-2, rtol=0)

    print("KERNEL_OK")
</pallas_src>

<mosaic_0001>
module attributes {stable_mosaic.version = 11 : i64} {
  func.func @_decoder_kernel(%arg0: i32, %arg1: i32, %arg2: memref<1x4x128xf32, #tpu.memory_space<vmem>>, %arg3: memref<128x1xf32, #tpu.memory_space<vmem>>, %arg4: memref<128x1xf32, #tpu.memory_space<vmem>>, %arg5: memref<128x128xbf16, #tpu.memory_space<vmem>>, %arg6: memref<128x1xf32, #tpu.memory_space<vmem>>, %arg7: memref<4x64x128xbf16, #tpu.memory_space<vmem>>, %arg8: memref<64x1xf32, #tpu.memory_space<vmem>>, %arg9: memref<1x64x1xf32, #tpu.memory_space<vmem>>, %arg10: memref<1x1xf32, #tpu.memory_space<smem>>, %arg11: memref<1x128xf32, #tpu.memory_space<vmem>>, %arg12: memref<1x128xf32, #tpu.memory_space<vmem>>) attributes {dimension_semantics = [#tpu.dimension_semantics<parallel>, #tpu.dimension_semantics<arbitrary>], iteration_bounds = array<i64: 1, 4>, scalar_prefetch = 0 : i64, scratch_operands = 1 : i64, tpu.core_type = #tpu.core_type<tc>, window_params = [{transform_indices = @transform_0, window_bounds = array<i64: 1, 4, 128>}, {pipeline_mode = #tpu.pipeline_mode<synchronous>, transform_indices = @transform_1, window_bounds = array<i64: 128, 1>}, {pipeline_mode = #tpu.pipeline_mode<synchronous>, transform_indices = @transform_2, window_bounds = array<i64: 128, 1>}, {pipeline_mode = #tpu.pipeline_mode<synchronous>, transform_indices = @transform_3, window_bounds = array<i64: 128, 128>}, {pipeline_mode = #tpu.pipeline_mode<synchronous>, transform_indices = @transform_4, window_bounds = array<i64: 128, 1>}, {pipeline_mode = #tpu.pipeline_mode<synchronous>, transform_indices = @transform_5, window_bounds = array<i64: 4, 64, 128>}, {pipeline_mode = #tpu.pipeline_mode<synchronous>, transform_indices = @transform_6, window_bounds = array<i64: 64, 1>}, {transform_indices = @transform_7, window_bounds = array<i64: 1, 64, 1>}, {transform_indices = @transform_8, window_bounds = array<i64: 1, 1>}, {transform_indices = @transform_9, window_bounds = array<i64: 1, 128>}]} {
    %c0 = arith.constant 0 : index
    %c0_0 = arith.constant 0 : index
    %0 = vector.load %arg3[%c0, %c0_0] : memref<128x1xf32, #tpu.memory_space<vmem>>, vector<128x1xf32>
    %c0_1 = arith.constant 0 : index
    %c0_2 = arith.constant 0 : index
    %1 = vector.load %arg4[%c0_1, %c0_2] : memref<128x1xf32, #tpu.memory_space<vmem>>, vector<128x1xf32>
    %c0_3 = arith.constant 0 : index
    %c0_4 = arith.constant 0 : index
    %2 = vector.load %arg5[%c0_3, %c0_4] : memref<128x128xbf16, #tpu.memory_space<vmem>>, vector<128x128xbf16>
    %c0_5 = arith.constant 0 : index
    %c0_6 = arith.constant 0 : index
    %3 = vector.load %arg6[%c0_5, %c0_6] : memref<128x1xf32, #tpu.memory_space<vmem>>, vector<128x1xf32>
    %c0_7 = arith.constant 0 : index
    %c0_8 = arith.constant 0 : index
    %4 = vector.load %arg8[%c0_7, %c0_8] : memref<64x1xf32, #tpu.memory_space<vmem>>, vector<64x1xf32>
    %c0_9 = arith.constant 0 : index
    %c0_10 = arith.constant 0 : index
    %c0_11 = arith.constant 0 : index
    %5 = vector.load %arg9[%c0_9, %c0_10, %c0_11] : memref<1x64x1xf32, #tpu.memory_space<vmem>>, vector<1x64x1xf32>
    %6 = vector.shape_cast %5 : vector<1x64x1xf32> to vector<64x1xf32>
    %c0_12 = arith.constant 0 : index
    %c0_13 = arith.constant 0 : index
    %7 = memref.load %arg10[%c0_12, %c0_13] : memref<1x1xf32, #tpu.memory_space<smem>>
    %c0_i32 = arith.constant 0 : i32
    %8 = arith.cmpi eq, %arg1, %c0_i32 : i32
    %9 = arith.extui %8 : i1 to i32
    %c0_i32_14 = arith.constant 0 : i32
    %10 = arith.cmpi ne, %9, %c0_i32_14 : i32
    scf.if %10 {
      %cst_59 = arith.constant 0.000000e+00 : f32
      %115 = vector.broadcast %cst_59 : f32 to vector<1x128xf32>
      %c0_60 = arith.constant 0 : index
      %c0_61 = arith.constant 0 : index
      %116 = vector.load %arg12[%c0_60, %c0_61] : memref<1x128xf32, #tpu.memory_space<vmem>>, vector<1x128xf32>
      tpu.vector_store %arg12[%c0_60, %c0_61], %115 {strides = array<i32>} : memref<1x128xf32, #tpu.memory_space<vmem>>, vector<1x128xf32>,
    } else {
    }
    %cst = arith.constant 0.000000e+00 : f32
    %11 = vector.broadcast %cst : f32 to vector<64x128xf32>
    %c0_15 = arith.constant 0 : index
    %c0_16 = arith.constant 0 : index
    %c0_17 = arith.constant 0 : index
    %12 = vector.load %arg2[%c0_15, %c0_16, %c0_17] : memref<1x4x128xf32, #tpu.memory_space<vmem>>, vector<1x1x128xf32>
    %13 = vector.shape_cast %12 : vector<1x1x128xf32> to vector<1x128xf32>
    %14 = vector.broadcast %0 : vector<128x1xf32> to vector<128x128xf32>
    %15 = vector.broadcast %13 : vector<1x128xf32> to vector<128x128xf32>
    %16 = arith.mulf %14, %15 : vector<128x128xf32>
    %17 = vector.broadcast %1 : vector<128x1xf32> to vector<128x128xf32>
    %18 = arith.addf %16, %17 : vector<128x128xf32>
    %cst_18 = arith.constant 2.000000e-01 : f32
    %19 = vector.broadcast %cst_18 : f32 to vector<128x128xf32>
    %20 = arith.mulf %19, %18 : vector<128x128xf32>
    %21 = arith.maximumf %18, %20 : vector<128x128xf32>
    %22 = arith.truncf %21 : vector<128x128xf32> to vector<128x128xbf16>
    %cst_19 = arith.constant dense<0.000000e+00> : vector<128x128xf32>
    %23 = tpu.matmul %2, %22, %cst_19 {dimension_numbers = #tpu.dot_dimension_numbers<[1], [0], [0], [1], [0, 0, 1, 1], [], []>} : vector<128x128xbf16>, vector<128x128xbf16>, vector<128x128xf32> -> vector<128x128xf32>
    %24 = vector.broadcast %3 : vector<128x1xf32> to vector<128x128xf32>
    %25 = arith.addf %23, %24 : vector<128x128xf32>
    %cst_20 = arith.constant 2.000000e-01 : f32
    %26 = vector.broadcast %cst_20 : f32 to vector<128x128xf32>
    %27 = arith.mulf %26, %25 : vector<128x128xf32>
    %28 = arith.maximumf %25, %27 : vector<128x128xf32>
    %c0_21 = arith.constant 0 : index
    %c0_22 = arith.constant 0 : index
    %c0_23 = arith.constant 0 : index
    %29 = vector.load %arg7[%c0_21, %c0_22, %c0_23] : memref<4x64x128xbf16, #tpu.memory_space<vmem>>, vector<1x64x128xbf16>
    %30 = vector.shape_cast %29 : vector<1x64x128xbf16> to vector<64x128xbf16>
    %31 = arith.truncf %28 : vector<128x128xf32> to vector<128x128xbf16>
    %cst_24 = arith.constant dense<0.000000e+00> : vector<64x128xf32>
    %32 = tpu.matmul %30, %31, %cst_24 {dimension_numbers = #tpu.dot_dimension_numbers<[1], [0], [0], [1], [0, 0, 1, 1], [], []>} : vector<64x128xbf16>, vector<128x128xbf16>, vector<64x128xf32> -> vector<64x128xf32>
    %33 = arith.addf %11, %32 : vector<64x128xf32>
    %c0_25 = arith.constant 0 : index
    %c1 = arith.constant 1 : index
    %c0_26 = arith.constant 0 : index
    %34 = vector.load %arg2[%c0_25, %c1, %c0_26] : memref<1x4x128xf32, #tpu.memory_space<vmem>>, vector<1x1x128xf32>
    %35 = vector.shape_cast %34 : vector<1x1x128xf32> to vector<1x128xf32>
    %36 = vector.broadcast %0 : vector<128x1xf32> to vector<128x128xf32>
    %37 = vector.broadcast %35 : vector<1x128xf32> to vector<128x128xf32>
    %38 = arith.mulf %36, %37 : vector<128x128xf32>
    %39 = vector.broadcast %1 : vector<128x1xf32> to vector<128x128xf32>
    %40 = arith.addf %38, %39 : vector<128x128xf32>
    %cst_27 = arith.constant 2.000000e-01 : f32
    %41 = vector.broadcast %cst_27 : f32 to vector<128x128xf32>
    %42 = arith.mulf %41, %40 : vector<128x128xf32>
    %43 = arith.maximumf %40, %42 : vector<128x128xf32>
    %44 = arith.truncf %43 : vector<128x128xf32> to vector<128x128xbf16>
    %cst_28 = arith.constant dense<0.000000e+00> : vector<128x128xf32>
    %45 = tpu.matmul %2, %44, %cst_28 {dimension_numbers = #tpu.dot_dimension_numbers<[1], [0], [0], [1], [0, 0, 1, 1], [], []>} : vector<128x128xbf16>, vector<128x128xbf16>, vector<128x128xf32> -> vector<128x128xf32>
    %46 = vector.broadcast %3 : vector<128x1xf32> to vector<128x128xf32>
    %47 = arith.addf %45, %46 : vector<128x128xf32>
    %cst_29 = arith.constant 2.000000e-01 : f32
    %48 = vector.broadcast %cst_29 : f32 to vector<128x128xf32>
    %49 = arith.mulf %48, %47 : vector<128x128xf32>
    %50 = arith.maximumf %47, %49 : vector<128x128xf32>
    %c1_30 = arith.constant 1 : index
    %c0_31 = arith.constant 0 : index
    %c0_32 = arith.constant 0 : index
    %51 = vector.load %arg7[%c1_30, %c0_31, %c0_32] : memref<4x64x128xbf16, #tpu.memory_space<vmem>>, vector<1x64x128xbf16>
    %52 = vector.shape_cast %51 : vector<1x64x128xbf16> to vector<64x128xbf16>
    %53 = arith.truncf %50 : vector<128x128xf32> to vector<128x128xbf16>
    %cst_33 = arith.constant dense<0.000000e+00> : vector<64x128xf32>
    %54 = tpu.matmul %52, %53, %cst_33 {dimension_numbers = #tpu.dot_dimension_numbers<[1], [0], [0], [1], [0, 0, 1, 1], [], []>} : vector<64x128xbf16>, vector<128x128xbf16>, vector<64x128xf32> -> vector<64x128xf32>
    %55 = arith.addf %33, %54 : vector<64x128xf32>
    %c0_34 = arith.constant 0 : index
    %c2 = arith.constant 2 : index
    %c0_35 = arith.constant 0 : index
    %56 = vector.load %arg2[%c0_34, %c2, %c0_35] : memref<1x4x128xf32, #tpu.memory_space<vmem>>, vector<1x1x128xf32>
    %57 = vector.shape_cast %56 : vector<1x1x128xf32> to vector<1x128xf32>
    %58 = vector.broadcast %0 : vector<128x1xf32> to vector<128x128xf32>
    %59 = vector.broadcast %57 : vector<1x128xf32> to vector<128x128xf32>
    %60 = arith.mulf %58, %59 : vector<128x128xf32>
    %61 = vector.broadcast %1 : vector<128x1xf32> to vector<128x128xf32>
    %62 = arith.addf %60, %61 : vector<128x128xf32>
    %cst_36 = arith.constant 2.000000e-01 : f32
    %63 = vector.broadcast %cst_36 : f32 to vector<128x128xf32>
    %64 = arith.mulf %63, %62 : vector<128x128xf32>
    %65 = arith.maximumf %62, %64 : vector<128x128xf32>
    %66 = arith.truncf %65 : vector<128x128xf32> to vector<128x128xbf16>
    %cst_37 = arith.constant dense<0.000000e+00> : vector<128x128xf32>
    %67 = tpu.matmul %2, %66, %cst_37 {dimension_numbers = #tpu.dot_dimension_numbers<[1], [0], [0], [1], [0, 0, 1, 1], [], []>} : vector<128x128xbf16>, vector<128x128xbf16>, vector<128x128xf32> -> vector<128x128xf32>
    %68 = vector.broadcast %3 : vector<128x1xf32> to vector<128x128xf32>
    %69 = arith.addf %67, %68 : vector<128x128xf32>
    %cst_38 = arith.constant 2.000000e-01 : f32
    %70 = vector.broadcast %cst_38 : f32 to vector<128x128xf32>
    %71 = arith.mulf %70, %69 : vector<128x128xf32>
    %72 = arith.maximumf %69, %71 : vector<128x128xf32>
    %c2_39 = arith.constant 2 : index
    %c0_40 = arith.constant 0 : index
    %c0_41 = arith.constant 0 : index
    %73 = vector.load %arg7[%c2_39, %c0_40, %c0_41] : memref<4x64x128xbf16, #tpu.memory_space<vmem>>, vector<1x64x128xbf16>
    %74 = vector.shape_cast %73 : vector<1x64x128xbf16> to vector<64x128xbf16>
    %75 = arith.truncf %72 : vector<128x128xf32> to vector<128x128xbf16>
    %cst_42 = arith.constant dense<0.000000e+00> : vector<64x128xf32>
    %76 = tpu.matmul %74, %75, %cst_42 {dimension_numbers = #tpu.dot_dimension_numbers<[1], [0], [0], [1], [0, 0, 1, 1], [], []>} : vector<64x128xbf16>, vector<128x128xbf16>, vector<64x128xf32> -> vector<64x128xf32>
    %77 = arith.addf %55, %76 : vector<64x128xf32>
    %c0_43 = arith.constant 0 : index
    %c3 = arith.constant 3 : index
    %c0_44 = arith.constant 0 : index
    %78 = vector.load %arg2[%c0_43, %c3, %c0_44] : memref<1x4x128xf32, #tpu.memory_space<vmem>>, vector<1x1x128xf32>
    %79 = vector.shape_cast %78 : vector<1x1x128xf32> to vector<1x128xf32>
    %80 = vector.broadcast %0 : vector<128x1xf32> to vector<128x128xf32>
    %81 = vector.broadcast %79 : vector<1x128xf32> to vector<128x128xf32>
    %82 = arith.mulf %80, %81 : vector<128x128xf32>
    %83 = vector.broadcast %1 : vector<128x1xf32> to vector<128x128xf32>
    %84 = arith.addf %82, %83 : vector<128x128xf32>
    %cst_45 = arith.constant 2.000000e-01 : f32
    %85 = vector.broadcast %cst_45 : f32 to vector<128x128xf32>
    %86 = arith.mulf %85, %84 : vector<128x128xf32>
    %87 = arith.maximumf %84, %86 : vector<128x128xf32>
    %88 = arith.truncf %87 : vector<128x128xf32> to vector<128x128xbf16>
    %cst_46 = arith.constant dense<0.000000e+00> : vector<128x128xf32>
    %89 = tpu.matmul %2, %88, %cst_46 {dimension_numbers = #tpu.dot_dimension_numbers<[1], [0], [0], [1], [0, 0, 1, 1], [], []>} : vector<128x128xbf16>, vector<128x128xbf16>, vector<128x128xf32> -> vector<128x128xf32>
    %90 = vector.broadcast %3 : vector<128x1xf32> to vector<128x128xf32>
    %91 = arith.addf %89, %90 : vector<128x128xf32>
    %cst_47 = arith.constant 2.000000e-01 : f32
    %92 = vector.broadcast %cst_47 : f32 to vector<128x128xf32>
    %93 = arith.mulf %92, %91 : vector<128x128xf32>
    %94 = arith.maximumf %91, %93 : vector<128x128xf32>
    %c3_48 = arith.constant 3 : index
    %c0_49 = arith.constant 0 : index
    %c0_50 = arith.constant 0 : index
    %95 = vector.load %arg7[%c3_48, %c0_49, %c0_50] : memref<4x64x128xbf16, #tpu.memory_space<vmem>>, vector<1x64x128xbf16>
    %96 = vector.shape_cast %95 : vector<1x64x128xbf16> to vector<64x128xbf16>
    %97 = arith.truncf %94 : vector<128x128xf32> to vector<128x128xbf16>
    %cst_51 = arith.constant dense<0.000000e+00> : vector<64x128xf32>
    %98 = tpu.matmul %96, %97, %cst_51 {dimension_numbers = #tpu.dot_dimension_numbers<[1], [0], [0], [1], [0, 0, 1, 1], [], []>} : vector<64x128xbf16>, vector<128x128xbf16>, vector<64x128xf32> -> vector<64x128xf32>
    %99 = arith.addf %77, %98 : vector<64x128xf32>
    %100 = vector.broadcast %4 : vector<64x1xf32> to vector<64x128xf32>
    %101 = arith.addf %99, %100 : vector<64x128xf32>
    %cst_52 = arith.constant 2.000000e-01 : f32
    %102 = vector.broadcast %cst_52 : f32 to vector<64x128xf32>
    %103 = arith.mulf %102, %101 : vector<64x128xf32>
    %104 = arith.maximumf %101, %103 : vector<64x128xf32>
    %c0_53 = arith.constant 0 : index
    %c0_54 = arith.constant 0 : index
    %105 = vector.load %arg12[%c0_53, %c0_54] : memref<1x128xf32, #tpu.memory_space<vmem>>, vector<1x128xf32>
    %106 = vector.broadcast %6 : vector<64x1xf32> to vector<64x128xf32>
    %107 = arith.mulf %104, %106 : vector<64x128xf32>
    %cst_55 = arith.constant dense<0.000000e+00> : vector<128xf32>
    %108 = vector.multi_reduction <add>, %107, %cst_55 [0] : vector<64x128xf32> to vector<128xf32>
    %109 = vector.shape_cast %108 : vector<128xf32> to vector<1x128xf32>
    %110 = arith.addf %105, %109 : vector<1x128xf32>
    %c0_56 = arith.constant 0 : index
    %c0_57 = arith.constant 0 : index
    %111 = vector.load %arg12[%c0_56, %c0_57] : memref<1x128xf32, #tpu.memory_space<vmem>>, vector<1x128xf32>
    tpu.vector_store %arg12[%c0_56, %c0_57], %110 {strides = array<i32>} : memref<1x128xf32, #tpu.memory_space<vmem>>, vector<1x128xf32>,
    %c3_i32 = arith.constant 3 : i32
    %112 = arith.cmpi eq, %arg1, %c3_i32 : i32
    %113 = arith.extui %112 : i1 to i32
    %c0_i32_58 = arith.constant 0 : i32
    %114 = arith.cmpi ne, %113, %c0_i32_58 : i32
    scf.if %114 {
      %c0_59 = arith.constant 0 : index
      %c0_60 = arith.constant 0 : index
      %115 = vector.load %arg12[%c0_59, %c0_60] : memref<1x128xf32, #tpu.memory_space<vmem>>, vector<1x128xf32>
      %116 = vector.broadcast %7 : f32 to vector<1x128xf32>
      %117 = arith.addf %115, %116 : vector<1x128xf32>
      %118 = math.tanh %117 : vector<1x128xf32>
      %c0_61 = arith.constant 0 : index
      %c0_62 = arith.constant 0 : index
      %119 = vector.load %arg11[%c0_61, %c0_62] : memref<1x128xf32, #tpu.memory_space<vmem>>, vector<1x128xf32>
      tpu.vector_store %arg11[%c0_61, %c0_62], %118 {strides = array<i32>} : memref<1x128xf32, #tpu.memory_space<vmem>>, vector<1x128xf32>,
    } else {
    }
    return
  }
  func.func @transform_0(%arg0: i32, %arg1: i32) -> (i32, i32, i32) {
    %c0_i32 = arith.constant 0 : i32
    %c0_i32_0 = arith.constant 0 : i32
    return %arg1, %c0_i32, %arg0 : i32, i32, i32
  }
  func.func @transform_1(%arg0: i32, %arg1: i32) -> (i32, i32) {
    %c0_i32 = arith.constant 0 : i32
    %c0_i32_0 = arith.constant 0 : i32
    %c0_i32_1 = arith.constant 0 : i32
    return %c0_i32, %c0_i32_0 : i32, i32
  }
  func.func @transform_2(%arg0: i32, %arg1: i32) -> (i32, i32) {
    %c0_i32 = arith.constant 0 : i32
    %c0_i32_0 = arith.constant 0 : i32
    %c0_i32_1 = arith.constant 0 : i32
    return %c0_i32, %c0_i32_0 : i32, i32
  }
  func.func @transform_3(%arg0: i32, %arg1: i32) -> (i32, i32) {
    %c0_i32 = arith.constant 0 : i32
    %c0_i32_0 = arith.constant 0 : i32
    %c0_i32_1 = arith.constant 0 : i32
    return %c0_i32, %c0_i32_0 : i32, i32
  }
  func.func @transform_4(%arg0: i32, %arg1: i32) -> (i32, i32) {
    %c0_i32 = arith.constant 0 : i32
    %c0_i32_0 = arith.constant 0 : i32
    %c0_i32_1 = arith.constant 0 : i32
    return %c0_i32, %c0_i32_0 : i32, i32
  }
  func.func @transform_5(%arg0: i32, %arg1: i32) -> (i32, i32, i32) {
    %c0_i32 = arith.constant 0 : i32
    %c0_i32_0 = arith.constant 0 : i32
    %c0_i32_1 = arith.constant 0 : i32
    %c0_i32_2 = arith.constant 0 : i32
    return %c0_i32, %c0_i32_0, %c0_i32_1 : i32, i32, i32
  }
  func.func @transform_6(%arg0: i32, %arg1: i32) -> (i32, i32) {
    %c0_i32 = arith.constant 0 : i32
    %c0_i32_0 = arith.constant 0 : i32
    %c0_i32_1 = arith.constant 0 : i32
    return %c0_i32, %c0_i32_0 : i32, i32
  }
  func.func @transform_7(%arg0: i32, %arg1: i32) -> (i32, i32, i32) {
    %c0_i32 = arith.constant 0 : i32
    %c0_i32_0 = arith.constant 0 : i32
    %c0_i32_1 = arith.constant 0 : i32
    return %arg1, %c0_i32, %c0_i32_0 : i32, i32, i32
  }
  func.func @transform_8(%arg0: i32, %arg1: i32) -> (i32, i32) {
    %c0_i32 = arith.constant 0 : i32
    %c0_i32_0 = arith.constant 0 : i32
    %c0_i32_1 = arith.constant 0 : i32
    return %c0_i32, %c0_i32_0 : i32, i32
  }
  func.func @transform_9(%arg0: i32, %arg1: i32) -> (i32, i32) {
    %c0_i32 = arith.constant 0 : i32
    %c0_i32_0 = arith.constant 0 : i32
    return %c0_i32, %arg0 : i32, i32
  }
}

</mosaic_0001>

<bundles_post_ra>
// kernel: squeeze.3
= control target key start
LH: loop header
LB: loop body
LE: loop exit
PB: predicated region body
PF: predicated region fallthrough
CT: control target
= control target key end

     0   :  { %s142_s0 = inlined_call_operand.vmem [shape: f32[32], index: 0, kind: input, shape index: {}]   ;;  %s143_s1 = inlined_call_operand.hbm [shape: f32[2,1,4,4], index: 1, kind: output, shape index: {}]  }
   0x1   :  { %v5_v0 = vld [vmem:[%s142_s0] sm:$0x1] }
   0x2   :  { %6 = vst [vmem:[#allocation3] sm:$0x1] %v5_v0 }
   0x3   :  { %2 = vsyncpa [#allocation1], 0  ;;  %s110_s0 = smov 124   ;;  %s111_s8 = smov 116   ;;  %vm8_vm0 = vcmask 31744  }
   0x4   :  { %s112_s9 = smov 108   ;;  %s113_s10 = smov 120  }
   0x5   :  { %s114_s11 = smov 112   ;;  %s115_s12 = smov 104  }
   0x6   :  { %s116_s13 = smov 100   ;;  %s117_s14 = smov [#allocation0]  }
   0x7   :  { %s67_s15 = sshll.u32 %s117_s14, 4  ;;  %s69_s1 = sshll.u32 %s143_s1, 4  ;;  %s68_s15 = int_to_ptr.vmem [resolvable:$true] %s67_s15  ;;  %s70_s1 = int_to_ptr.hbm [resolvable:$true] %s69_s1 }
   0x9   :  { %v10_v1 = vld [vmem:[#allocation3] sm:$0x1]  }
   0xa   :  { %v22_v2 = vld [vmem:[#allocation3] sm:$0x1]   ;;  %11 = vrot.lane.b32.xlu0 %v10_v1, %s110_s0 }
   0xb   :  { %23 = vrot.lane.b32.xlu1 %v22_v2, %s111_s8  ;;  %v34_v3 = vld [vmem:[#allocation3] sm:$0x1]  }
   0xc   :  { %35 = vrot.lane.b32.xlu2 %v34_v3, %s112_s9  ;;  %v16_v4 = vld [vmem:[#allocation3] sm:$0x1]  }
   0xd   :  { %v28_v5 = vld [vmem:[#allocation3] sm:$0x1]  }
   0xe   :  { %v40_v6 = vld [vmem:[#allocation3] sm:$0x1]  }
   0xf   :  { %v46_v7 = vld [vmem:[#allocation3] sm:$0x1]  }
  0x10   :  { %v7_v8 = vld [vmem:[#allocation3] sm:$0x1]  }
  0x11   :  { %9 = vst.msk [vmem:[#allocation2] sm:$0x1] %vm8_vm0, %v7_v8  }
  0x12   :  { %17 = vrot.lane.b32.xlu0 %v16_v4, %s113_s10 }
  0x13   :  { %29 = vrot.lane.b32.xlu1 %v28_v5, %s114_s11 }
  0x14   :  { %41 = vrot.lane.b32.xlu2 %v40_v6, %s115_s12 }
  0x1a   :  { %47 = vrot.lane.b32.xlu0 %v46_v7, %s116_s13 }
  0x66   :  { %v36_v9 = vpop.permute.xlu2 %35  }
  0x67   :  { %39 = vst.msk [vmem:[#allocation2 + $0x9] sm:$0x1] %vm8_vm0, %v36_v9  }
  0x6e   :  { %v42_v10 = vpop.permute.xlu2 %41  }
  0x6f   :  { %45 = vst.msk [vmem:[#allocation2 + $0xa] sm:$0x1] %vm8_vm0, %v42_v10  }
  0x7c   :  { %v12_v11 = vpop.permute.xlu0 %11  }
  0x7d   :  { %v24_v12 = vpop.permute.xlu1 %23   ;;  %15 = vst.msk [vmem:[#allocation2 + $0x1] sm:$0x1] %vm8_vm0, %v12_v11  }
  0x7e   :  { %27 = vst.msk [vmem:[#allocation2 + $0x3] sm:$0x1] %vm8_vm0, %v24_v12  }
  0x84   :  { %v18_v13 = vpop.permute.xlu0 %17  }
  0x85   :  { %v30_v14 = vpop.permute.xlu1 %29   ;;  %21 = vst.msk [vmem:[#allocation2 + $0x2] sm:$0x1] %vm8_vm0, %v18_v13  }
  0x86   :  { %33 = vst.msk [vmem:[#allocation2 + $0x8] sm:$0x1] %vm8_vm0, %v30_v14  }
  0x8c   :  { %v48_v15 = vpop.permute.xlu0 %47   ;;  %v54_v16 = vld [vmem:[#allocation2] sm:$0xf] }
  0x8d   :  { %51 = vst.msk [vmem:[#allocation2 + $0xb] sm:$0x1] %vm8_vm0, %v48_v15  }
  0x8e   :  { %57 = vst [vmem:[#allocation0] sm:$0xf] %v54_v16 }
  0x94   :  { %v59_v17 = vld [vmem:[#allocation2 + $0x8] sm:$0xf] }
  0x95   :  { %63 = vst [vmem:[#allocation0 + $0x4] sm:$0xf] %v59_v17 }
  0x96   :  { %72 = dma.vmem_to_hbm [thread:$0]  %s68_s15, 128, %s70_s1, [#allocation1]  }
  0x97   :  { %108 = dma.done.wait [#allocation1], 128  }
  0x98   :  { %109 = vsyncadd [#allocation1], 4294967168 }
  0x99   :  { %75 = vsyncpa [#allocation1], 1 }

// kernel: conv_decoder_forward.1
= control target key start
LH: loop header
LB: loop body
LE: loop exit
PB: predicated region body
PF: predicated region fallthrough
CT: control target
= control target key end

     0   :  { %s2143_s11 = smov 0   ;;  %s2145_s12 = smov 0   ;;  %s3163_s0 = inlined_call_operand.vmem [shape: f32[4,4,128], index: 0, kind: input, shape index: {}]   ;;  %s3164_s1 = inlined_call_operand.vmem [shape: f32[128,1], index: 1, kind: input, shape index: {}]   ;;  %s3165_s2 = inlined_call_operand.vmem [shape: f32[128,1], index: 2, kind: input, shape index: {}]   ;;  %s3166_s3 = inlined_call_operand.vmem [shape: bf16[128,128], index: 3, kind: input, shape index: {}]   ;;  %s3167_s4 = inlined_call_operand.vmem [shape: f32[128,1], index: 4, kind: input, shape index: {}]   ;;  %s3168_s5 = inlined_call_operand.vmem [shape: bf16[4,64,128], index: 5, kind: input, shape index: {}]   ;;  %s3169_s6 = inlined_call_operand.vmem [shape: f32[64,1], index: 6, kind: input, shape index: {}]   ;;  %s3170_s7 = inlined_call_operand.vmem [shape: f32[4,64,1], index: 7, kind: input, shape index: {}]   ;;  %s3171_s8 = inlined_call_operand.<no memory space> [shape: f32[1,1], index: 8, kind: input, shape index: {}]   ;;  %s3172_s9 = inlined_call_operand.vmem [shape: f32[1,128], index: 9, kind: output, shape index: {}]  }
   0x1   :  { %14 = sst [smem:[#allocation3]] %s3171_s8  ;;  %s2147_s13 = smov 0  }
   0x2 LB: > { %s29_s8 = sadd.s32 1, %s2082_s12  ;;  %p1867_p0 = scmp.ge.s32.totalorder %s2086_s13, 1  ;;  %s2086_s13 = sphi %s2147_s13, %s20_s13   ;;  %s2082_s12 = sphi %s2145_s12, %s3231_s12   ;;  %s2078_s11 = sphi %s2143_s11, %s3230_s11  }
   0x3   : > { %p30_p1 = scmp.ge.s32.totalorder %s29_s8, 4  ;;  %p314_p2 = scmp.lt.s32.totalorder %s2086_s13, 5 }
   0x5   : > { %s3233_s8 = smov (%p30_p1, %s29_s8), 0  ;;  %p315_p3 = pnand %p1867_p0, %p314_p2 }
   0x7   : > { %318 = sbr.rel (%p315_p3) target bundleno = 1127 (0x467), region = 56 }
   0xc   : > { %p355_p4 = scmp.lt.s32.totalorder %s2078_s11, 3  ;;  %v2167_v0 = vld [vmem:[%s3164_s1] sm:$0xff]  ;;  %v2172_v1 = vld [vmem:[%s3164_s1 + $0x8] sm:$0xff]  ;;  %v2177_v2 = vld [vmem:[%s3164_s1 + $0x10] sm:$0xff]  ;;  %s2179_s20 = sld [smem:[#allocation3]] }
   0xd   : > { %v2184_v3 = vld [vmem:[%s3164_s1 + $0x18] sm:$0xff]  ;;  %v2189_v4 = vld [vmem:[%s3164_s1 + $0x20] sm:$0xff]  ;;  %v2194_v5 = vld [vmem:[%s3164_s1 + $0x28] sm:$0xff]  ;;  %p1871_p5 = scmp.ne.s32.totalorder %s2078_s11, 0 }
   0xe   : > { %s2197_s27 = scalar_select %p355_p4, %s2078_s11, 3  ;;  %v2202_v6 = vld [vmem:[%s3164_s1 + $0x30] sm:$0xff]  ;;  %v2207_v7 = vld [vmem:[%s3164_s1 + $0x38] sm:$0xff]  ;;  %v2212_v8 = vld [vmem:[%s3164_s1 + $0x40] sm:$0xff] }
   0xf   : > { %v2217_v9 = vld [vmem:[%s3164_s1 + $0x48] sm:$0xff]  ;;  %v2222_v10 = vld [vmem:[%s3164_s1 + $0x50] sm:$0xff]  ;;  %v2227_v11 = vld [vmem:[%s3164_s1 + $0x58] sm:$0xff] }
  0x10   : > { %s1868_s23 = sshll.u32 %s2197_s27, 2  ;;  %v2233_v12 = vld [vmem:[%s3164_s1 + $0x60] sm:$0xff]  ;;  %v2238_v13 = vld [vmem:[%s3164_s1 + $0x68] sm:$0xff]  ;;  %v2243_v14 = vld [vmem:[%s3164_s1 + $0x70] sm:$0xff]  ;;  %s1996_s19 = sshll.u32 %s2197_s27, 6 }
  0x11   : > { %s2248_s15 = scalar_lea.vmem %s3163_s0, %s1868_s23  ;;  %v2253_v15 = vld [vmem:[%s3164_s1 + $0x78] sm:$0xff]  ;;  %v2258_v16 = vld [vmem:[%s3165_s2] sm:$0xff]  ;;  %v2263_v17 = vld [vmem:[%s3165_s2 + $0x8] sm:$0xff]  ;;  %s366_s26 = scalar_lea.vmem %s3170_s7, %s1996_s19 }
  0x12   : > { %v2268_v18 = vld [vmem:[%s3165_s2 + $0x10] sm:$0xff]  ;;  %v2273_v19 = vld [vmem:[%s3165_s2 + $0x18] sm:$0xff]  ;;  %v2278_v20 = vld [vmem:[%s3165_s2 + $0x20] sm:$0xff] }
  0x13   : > { %v2283_v21 = vld [vmem:[%s3165_s2 + $0x28] sm:$0xff]  ;;  %v2288_v22 = vld [vmem:[%s3165_s2 + $0x30] sm:$0xff]  ;;  %v2293_v23 = vld [vmem:[%s3165_s2 + $0x38] sm:$0xff] }
  0x14   : > { %v2298_v24 = vld [vmem:[%s3165_s2 + $0x40] sm:$0xff]  ;;  %v2303_v25 = vld [vmem:[%s3165_s2 + $0x48] sm:$0xff]  ;;  %v2308_v26 = vld [vmem:[%s3165_s2 + $0x50] sm:$0xff] }
  0x15   : > { %v2313_v27 = vld [vmem:[%s3165_s2 + $0x58] sm:$0xff]  ;;  %v2318_v28 = vld [vmem:[%s3165_s2 + $0x60] sm:$0xff]  ;;  %v2323_v29 = vld [vmem:[%s3165_s2 + $0x68] sm:$0xff] }
  0x16   : > { %v400_v30 = vld [vmem:[%s3165_s2 + $0x70] sm:$0xff]  ;;  %v2331_v31 = vld [vmem:[%s3165_s2 + $0x78] sm:$0xff]  ;;  %v2336_v32 = vld [vmem:[%s3166_s3] sm:$0xf] }
  0x17   : > { %3180 = vst [vmem:[#allocation4_spill] sm:$0xff] %v2336_v32  ;;  %v2341_v33 = vld [vmem:[%s3166_s3] sm:$0xf0]  ;;  %v2346_v34 = vld [vmem:[%s3166_s3 + $0x8] sm:$0xf]  ;;  %v2426_v50 = vld [vmem:[%s3167_s4 + $0x10] sm:$0xff] }
  0x18   : > { %3181 = vst [vmem:[#allocation5_spill] sm:$0xff] %v2341_v33  ;;  %v2351_v35 = vld [vmem:[%s3166_s3 + $0x8] sm:$0xf0]  ;;  %v2356_v36 = vld [vmem:[%s3166_s3 + $0x10] sm:$0xf]  ;;  %v2416_v48 = vld [vmem:[%s3167_s4] sm:$0xff] }
  0x19   : > { %3182 = vst [vmem:[#allocation6_spill] sm:$0xff] %v2346_v34  ;;  %v2361_v37 = vld [vmem:[%s3166_s3 + $0x10] sm:$0xf0]  ;;  %v2366_v38 = vld [vmem:[%s3166_s3 + $0x18] sm:$0xf]  ;;  %v2421_v49 = vld [vmem:[%s3167_s4 + $0x8] sm:$0xff] }
  0x1a   : > { %3183 = vst [vmem:[#allocation7_spill] sm:$0xff] %v2351_v35  ;;  %v2371_v39 = vld [vmem:[%s3166_s3 + $0x18] sm:$0xf0]  ;;  %v2376_v40 = vld [vmem:[%s3166_s3 + $0x20] sm:$0xf]  ;;  %v2441_v53 = vld [vmem:[%s3167_s4 + $0x28] sm:$0xff] }
  0x1b   : > { %3184 = vst [vmem:[#allocation8_spill] sm:$0xff] %v2356_v36  ;;  %v2381_v41 = vld [vmem:[%s3166_s3 + $0x20] sm:$0xf0]  ;;  %v2386_v42 = vld [vmem:[%s3166_s3 + $0x28] sm:$0xf]  ;;  %v2431_v51 = vld [vmem:[%s3167_s4 + $0x18] sm:$0xff] }
  0x1c   : > { %3185 = vst [vmem:[#allocation9_spill] sm:$0xff] %v2361_v37  ;;  %v2391_v43 = vld [vmem:[%s3166_s3 + $0x28] sm:$0xf0]  ;;  %v2396_v44 = vld [vmem:[%s3166_s3 + $0x30] sm:$0xf]  ;;  %v2436_v52 = vld [vmem:[%s3167_s4 + $0x20] sm:$0xff] }
  0x1d   : > { %3186 = vst [vmem:[#allocation10_spill] sm:$0xff] %v2366_v38  ;;  %v2401_v45 = vld [vmem:[%s3166_s3 + $0x30] sm:$0xf0]  ;;  %v2406_v46 = vld [vmem:[%s3166_s3 + $0x38] sm:$0xf]  ;;  %v2457_v56 = vld [vmem:[%s3167_s4 + $0x40] sm:$0xff] }
  0x1e   : > { %3187 = vst [vmem:[#allocation11_spill] sm:$0xff] %v2371_v39  ;;  %v2411_v47 = vld [vmem:[%s3166_s3 + $0x38] sm:$0xf0]  ;;  %v2447_v54 = vld [vmem:[%s3167_s4 + $0x30] sm:$0xff]  ;;  %v2462_v57 = vld [vmem:[%s3167_s4 + $0x48] sm:$0xff] }
  0x1f   : > { %3188 = vst [vmem:[#allocation12_spill] sm:$0xff] %v2376_v40  ;;  %v2452_v55 = vld [vmem:[%s3167_s4 + $0x38] sm:$0xff]  ;;  %v2467_v58 = vld [vmem:[%s3167_s4 + $0x50] sm:$0xff]  ;;  %v2477_v60 = vld [vmem:[%s3167_s4 + $0x60] sm:$0xff] }
  0x20   : > { %3189 = vst [vmem:[#allocation13_spill] sm:$0xff] %v2381_v41  ;;  %v2472_v59 = vld [vmem:[%s3167_s4 + $0x58] sm:$0xff]  ;;  %v431_v61 = vld [vmem:[%s3167_s4 + $0x68] sm:$0xff]  ;;  %v432_v62 = vld [vmem:[%s3167_s4 + $0x70] sm:$0xff] }
  0x21   : > { %3190 = vst [vmem:[#allocation14_spill] sm:$0xff] %v2386_v42  ;;  %v433_v63 = vld [vmem:[%s3167_s4 + $0x78] sm:$0xff]  ;;  %v2504_v39 = vld [vmem:[%s3169_s6 + $0x10] sm:$0xff]  ;;  %v2533_v42 = vld [vmem:[%s366_s26 + $0x8] sm:$0xff] }
  0x22   : > { %3191 = vst [vmem:[#allocation15_spill] sm:$0xff] %v2391_v43  ;;  %v2509_v38 = vld [vmem:[%s3169_s6 + $0x18] sm:$0xff]  ;;  %v2524_v37 = vld [vmem:[%s3169_s6 + $0x30] sm:$0xff]  ;;  %v2531_v43 = vld [vmem:[%s366_s26] sm:$0xff] }
  0x23   : > { %3192 = vst [vmem:[#allocation16_spill] sm:$0xff] %v2396_v44  ;;  %v2519_v44 = vld [vmem:[%s3169_s6 + $0x28] sm:$0xff]  ;;  %v2529_v36 = vld [vmem:[%s3169_s6 + $0x38] sm:$0xff]  ;;  %v2535_v35 = vld [vmem:[%s366_s26 + $0x10] sm:$0xff] }
  0x24   : > { %3193 = vst [vmem:[#allocation17_spill] sm:$0xff] %v2401_v45  ;;  %v2514_v45 = vld [vmem:[%s3169_s6 + $0x20] sm:$0xff]  ;;  %v2537_v34 = vld [vmem:[%s366_s26 + $0x18] sm:$0xff]  ;;  %v2541_v40 = vld [vmem:[%s366_s26 + $0x28] sm:$0xff]  ;;  %454 = sbr.rel (%p1871_p5) target bundleno = 43 (0x2b), region = 60 }
  0x25   : > { %3194 = vst [vmem:[#allocation18_spill] sm:$0xff] %v2406_v46  ;;  %v2499_v46 = vld [vmem:[%s3169_s6 + $0x8] sm:$0xff]  ;;  %v2539_v41 = vld [vmem:[%s366_s26 + $0x20] sm:$0xff]  ;;  %v2543_v33 = vld [vmem:[%s366_s26 + $0x30] sm:$0xff] }
  0x26   : > { %3195 = vst [vmem:[#allocation19_spill] sm:$0xff] %v2411_v47  ;;  %v2494_v47 = vld [vmem:[%s3169_s6] sm:$0xff]  ;;  %v2545_v32 = vld [vmem:[%s366_s26 + $0x38] sm:$0xff] }
  0x27   : > { %3196 = vst [vmem:[#allocation20_spill] sm:$0xff] %v2524_v37 }
  0x28   : > { %3197 = vst [vmem:[#allocation21_spill] sm:$0xff] %v2529_v36 }
  0x29   : > { %v2088_v37 = vmov 0.0  }
  0x2a   : > { %455 = vst [vmem:[#allocation2] sm:$0x1] %v2088_v37 }
  0x2b PF: > { %v2089_v36 = vmov 0   ;;  %p1992_p6 = scmp.ne.s32.totalorder %s2078_s11, 3 }
  0x2c   : > { %2057 = vset.pattern.permute.xlu2 %v2089_v36  ;;  %2056 = vset.pattern.permute.xlu1 %v2089_v36 }
  0x2d   : > { %2055 = vset.pattern.permute.xlu0 %v2089_v36  ;;  %519 = vperm.xlu2 %2057, %v2233_v12  }
  0x2e   : > { %626 = vperm.xlu1 %2056, %v400_v30   ;;  %529 = vperm.xlu0 %2055, %v2243_v14  }
  0x35   : > { %524 = vperm.xlu2 %2057, %v2238_v13  }
  0x36   : > { %631 = vperm.xlu1 %2056, %v2331_v31   ;;  %534 = vperm.xlu0 %2055, %v2253_v15  }
  0x3d   : > { %509 = vperm.xlu2 %2057, %v2222_v10  }
  0x3e   : > { %621 = vperm.xlu1 %2056, %v2323_v29   ;;  %616 = vperm.xlu0 %2055, %v2318_v28  }
  0x45   : > { %611 = vperm.xlu2 %2057, %v2313_v27  }
  0x46   : > { %606 = vperm.xlu1 %2056, %v2308_v26   ;;  %514 = vperm.xlu0 %2055, %v2227_v11  }
  0x4d   : > { %596 = vperm.xlu2 %2057, %v2298_v24  }
  0x4e   : > { %504 = vperm.xlu1 %2056, %v2217_v9   ;;  %499 = vperm.xlu0 %2055, %v2212_v8  }
  0x55   : > { %494 = vperm.xlu2 %2057, %v2207_v7  }
  0x56   : > { %489 = vperm.xlu1 %2056, %v2202_v6   ;;  %601 = vperm.xlu0 %2055, %v2303_v25  }
  0x5d   : > { %479 = vperm.xlu2 %2057, %v2189_v4   ;;  %v2594_v4 = vld [vmem:[%s2248_s15 + $0x1] ss:$0 sm:$0xff] }
  0x5e   : > { %591 = vperm.xlu1 %2056, %v2293_v23   ;;  %586 = vperm.xlu0 %2055, %v2288_v22  }
  0x65   : > { %581 = vperm.xlu2 %2057, %v2283_v21  }
  0x66   : > { %576 = vperm.xlu1 %2056, %v2278_v20   ;;  %484 = vperm.xlu0 %2055, %v2194_v5   ;;  %v2597_v5 = vld [vmem:[%s2248_s15] ss:$0 sm:$0xff] }
  0x6d   : > { %566 = vperm.xlu2 %2057, %v2268_v18  }
  0x6e   : > { %474 = vperm.xlu1 %2056, %v2184_v3   ;;  %469 = vperm.xlu0 %2055, %v2177_v2   ;;  %v2587_v2 = vld [vmem:[%s2248_s15 + $0x2] ss:$0 sm:$0xff]  ;;  %v2590_v3 = vld [vmem:[%s2248_s15 + $0x3] ss:$0 sm:$0xff] }
  0x75   : > { %464 = vperm.xlu2 %2057, %v2172_v1  }
  0x76   : > { %459 = vperm.xlu1 %2056, %v2167_v0   ;;  %571 = vperm.xlu0 %2055, %v2273_v19  }
  0x7d   : > { %762 = vperm.xlu2 %2057, %v432_v62  }
  0x7e   : > { %561 = vperm.xlu1 %2056, %v2263_v17   ;;  %556 = vperm.xlu0 %2055, %v2258_v16  }
  0x85   : > { %757 = vperm.xlu2 %2057, %v431_v61  }
  0x86   : > { %752 = vperm.xlu1 %2056, %v2477_v60   ;;  %767 = vperm.xlu0 %2055, %v433_v63  }
  0x87   : > { %v520_v0 = vpop.permute.xlu2 %519 }
  0x88   : > { %v550_v23 = vmul.f32 %v2597_v5, %v520_v0  ;;  %v929_v24 = vmul.f32 %v2594_v4, %v520_v0  ;;  %v1207_v31 = vmul.f32 %v2587_v2, %v520_v0  ;;  %v1440_v36 = vmul.f32 %v2590_v3, %v520_v0 }
  0x8d   : > { %732 = vperm.xlu2 %2057, %v2457_v56  }
  0x8e   : > { %747 = vperm.xlu1 %2056, %v2472_v59   ;;  %742 = vperm.xlu0 %2055, %v2467_v58  }
  0x8f   : > { %v525_v1 = vpop.permute.xlu2 %524 }
  0x90   : > { %v1208_v61 = vmul.f32 %v2587_v2, %v525_v1  ;;  %v1441_v62 = vmul.f32 %v2590_v3, %v525_v1 }
  0x95   : > { %727 = vperm.xlu2 %2057, %v2452_v55  }
  0x96   : > { %722 = vperm.xlu1 %2056, %v2447_v54   ;;  %737 = vperm.xlu0 %2055, %v2462_v57   ;;  %v930_v54 = vmul.f32 %v2594_v4, %v525_v1 }
  0x97   : > { %v2605_v12 = vpop.permute.xlu2 %509 }
  0x9d   : > { %702 = vperm.xlu2 %2057, %v2426_v50  }
  0x9e   : > { %717 = vperm.xlu1 %2056, %v2441_v53   ;;  %712 = vperm.xlu0 %2055, %v2436_v52  }
  0x9f   : > { %v2622_v50 = vpop.permute.xlu2 %611 }
  0xa0   : > { %v627_v6 = vpop.permute.xlu1 %626  ;;  %v530_v7 = vpop.permute.xlu0 %529 }
  0xa1   : > { %v1209_v8 = vmul.f32 %v2587_v2, %v530_v7  ;;  %v1442_v9 = vmul.f32 %v2590_v3, %v530_v7  ;;  %v552_v10 = vmul.f32 %v2597_v5, %v530_v7  ;;  %v931_v11 = vmul.f32 %v2594_v4, %v530_v7 }
  0xa3   : > { %v1458_v13 = vadd.f32 %v1442_v9, %v627_v6  ;;  %v2607_v14 = vadd.f32 %v1209_v8, %v627_v6  ;;  %v648_v15 = vadd.f32 %v627_v6, %v552_v10  ;;  %v947_v16 = vadd.f32 %v931_v11, %v627_v6 }
  0xa5   : > { %697 = vperm.xlu2 %2057, %v2421_v49   ;;  %v664_v25 = vmul.f32 0.2, %v648_v15  ;;  %v963_v26 = vmul.f32 0.2, %v947_v16  ;;  %v1474_v37 = vmul.f32 0.2, %v1458_v13  ;;  %v551_v49 = vmul.f32 %v2597_v5, %v525_v1 }
  0xa6   : > { %692 = vperm.xlu1 %2056, %v2416_v48   ;;  %707 = vperm.xlu0 %2055, %v2431_v51   ;;  %v1241_v48 = vmul.f32 0.2, %v2607_v14 }
  0xa7   : > { %v680_v55 = vmax.f32 %v648_v15, %v664_v25  ;;  %v979_v56 = vmax.f32 %v947_v16, %v963_v26  ;;  %v1490_v0 = vmax.f32 %v1458_v13, %v1474_v37 }
  0xa8   : > { %v632_v17 = vpop.permute.xlu1 %631  ;;  %v535_v18 = vpop.permute.xlu0 %534  ;;  %v1257_v6 = vmax.f32 %v2607_v14, %v1241_v48 }
  0xa9   : > { %v553_v19 = vmul.f32 %v2597_v5, %v535_v18  ;;  %v932_v20 = vmul.f32 %v2594_v4, %v535_v18  ;;  %v1210_v21 = vmul.f32 %v2587_v2, %v535_v18  ;;  %v1443_v22 = vmul.f32 %v2590_v3, %v535_v18 }
  0xab   : > { %v649_v27 = vadd.f32 %v632_v17, %v553_v19  ;;  %v948_v28 = vadd.f32 %v932_v20, %v632_v17  ;;  %v1459_v29 = vadd.f32 %v1443_v22, %v632_v17  ;;  %v1226_v30 = vadd.f32 %v1210_v21, %v632_v17 }
  0xad   : > { %1671 = vperm.xlu2 %2057, %v2504_v39   ;;  %v665_v51 = vmul.f32 0.2, %v649_v27  ;;  %v964_v52 = vmul.f32 0.2, %v948_v28  ;;  %v1475_v53 = vmul.f32 0.2, %v1459_v29 }
  0xae   : > { %1666 = vperm.xlu1 %2056, %v2499_v46   ;;  %1661 = vperm.xlu0 %2055, %v2494_v47   ;;  %v1242_v60 = vmul.f32 0.2, %v1226_v30 }
  0xaf   : > { %v681_v57 = vmax.f32 %v649_v27, %v665_v51  ;;  %v980_v58 = vmax.f32 %v948_v28, %v964_v52  ;;  %v1491_v59 = vmax.f32 %v1459_v29, %v1475_v53  ;;  %v2638_v28 = vpop.permute.xlu2 %596 }
  0xb0   : > { %v622_v39 = vpop.permute.xlu1 %621  ;;  %v617_v63 = vpop.permute.xlu0 %616  ;;  %v1258_v1 = vmax.f32 %v1226_v30, %v1242_v60 }
  0xb1   : > { %v689_v7 = vpack.c.bf16 %v681_v57, %v680_v55  ;;  %v988_v8 = vpack.c.bf16 %v980_v58, %v979_v56  ;;  %v646_v46 = vadd.f32 %v617_v63, %v550_v23  ;;  %v647_v9 = vadd.f32 %v622_v39, %v551_v49 }
  0xb2   : > { %v945_v47 = vadd.f32 %v929_v24, %v617_v63  ;;  %v946_v10 = vadd.f32 %v930_v54, %v622_v39  ;;  %v2631_v11 = vpack.c.bf16 %v1491_v59, %v1490_v0  ;;  %v1456_v15 = vadd.f32 %v1440_v36, %v617_v63 }
  0xb3   : > { %818 = vmatpush.bf16.msra.mxu0 %v689_v7  ;;  %2021 = vmatpush.bf16.msra.mxu3 %v689_v7  ;;  %v662_v16 = vmul.f32 0.2, %v646_v46  ;;  %v663_v17 = vmul.f32 0.2, %v647_v9  ;;  %v1457_v18 = vadd.f32 %v1441_v62, %v622_v39  ;;  %v1223_v14 = vadd.f32 %v1207_v31, %v617_v63 }
  0xb4   : > { %989 = vmatpush.bf16.msra.mxu1 %v988_v8  ;;  %v961_v19 = vmul.f32 0.2, %v945_v47  ;;  %v962_v13 = vmul.f32 0.2, %v946_v10  ;;  %v1472_v20 = vmul.f32 0.2, %v1456_v15  ;;  %v2634_v24 = vpack.c.bf16 %v1258_v1, %v1257_v6 }
  0xb5   : > { %1726 = vperm.xlu2 %2057, %v2531_v43   ;;  %v678_v21 = vmax.f32 %v646_v46, %v662_v16  ;;  %v679_v22 = vmax.f32 %v647_v9, %v663_v17  ;;  %v1473_v23 = vmul.f32 0.2, %v1457_v18  ;;  %v1224_v36 = vadd.f32 %v1208_v61, %v622_v39 }
  0xb6   : > { %1681 = vperm.xlu1 %2056, %v2514_v45   ;;  %1676 = vperm.xlu0 %2055, %v2509_v38   ;;  %v977_v25 = vmax.f32 %v945_v47, %v961_v19  ;;  %v978_v26 = vmax.f32 %v946_v10, %v962_v13  ;;  %v1488_v27 = vmax.f32 %v1456_v15, %v1472_v20  ;;  %v1239_v45 = vmul.f32 0.2, %v1223_v14 }
  0xb7   : > { %v688_v29 = vpack.c.bf16 %v679_v22, %v678_v21  ;;  %v1489_v30 = vmax.f32 %v1457_v18, %v1473_v23  ;;  %v548_v43 = vmul.f32 %v2597_v5, %v2605_v12  ;;  %v927_v31 = vmul.f32 %v2594_v4, %v2605_v12  ;;  %v3198_v23 = vld [vmem:[#allocation21_spill] sm:$0xff] }
  0xb8   : > { %v607_v37 = vpop.permute.xlu1 %606  ;;  %v2644_v48 = vpop.permute.xlu0 %514  ;;  %v1205_v38 = vmul.f32 %v2587_v2, %v2605_v12  ;;  %v1438_v49 = vmul.f32 %v2590_v3, %v2605_v12  ;;  %v987_v53 = vpack.c.bf16 %v978_v26, %v977_v25  ;;  %v1240_v61 = vmul.f32 0.2, %v1224_v36  ;;  %v3199_v26 = vld [vmem:[#allocation20_spill] sm:$0xff] }
  0xb9   : > { %v549_v51 = vmul.f32 %v2597_v5, %v2644_v48  ;;  %v928_v52 = vmul.f32 %v2594_v4, %v2644_v48  ;;  %819 = vmatpush.bf16.msra.mxu0 %v688_v29  ;;  %2022 = vmatpush.bf16.msra.mxu3 %v688_v29  ;;  %v644_v54 = vadd.f32 %v607_v37, %v548_v43 }
  0xba   : > { %v943_v55 = vadd.f32 %v927_v31, %v607_v37  ;;  %v2654_v56 = vpack.c.bf16 %v1489_v30, %v1488_v27  ;;  %v1206_v57 = vmul.f32 %v2587_v2, %v2644_v48  ;;  %v2660_v59 = vadd.f32 %v1438_v49, %v607_v37  ;;  %990 = vmatpush.bf16.msra.mxu1 %v987_v53 }
  0xbb   : > { %v645_v58 = vadd.f32 %v2622_v50, %v549_v51  ;;  %v944_v12 = vadd.f32 %v928_v52, %v2622_v50  ;;  %v660_v60 = vmul.f32 0.2, %v644_v54  ;;  %v1255_v62 = vmax.f32 %v1223_v14, %v1239_v45 }
  0xbc   : > { %v959_v63 = vmul.f32 0.2, %v943_v55  ;;  %v1221_v6 = vadd.f32 %v1205_v38, %v607_v37  ;;  %v1256_v7 = vmax.f32 %v1224_v36, %v1240_v61  ;;  %v1222_v9 = vadd.f32 %v1206_v57, %v2622_v50 }
  0xbd   : > { %1736 = vperm.xlu2 %2057, %v2535_v35   ;;  %v661_v39 = vmul.f32 0.2, %v645_v58  ;;  %v960_v0 = vmul.f32 0.2, %v944_v12  ;;  %v2672_v35 = vpop.permute.xlu2 %494  ;;  %v676_v16 = vmax.f32 %v644_v54, %v660_v60 }
  0xbe   : > { %1686 = vperm.xlu1 %2056, %v2519_v44   ;;  %1731 = vperm.xlu0 %2055, %v2533_v42   ;;  %v2670_v15 = vpack.c.bf16 %v1256_v7, %v1255_v62  ;;  %v975_v17 = vmax.f32 %v943_v55, %v959_v63  ;;  %v1237_v18 = vmul.f32 0.2, %v1221_v6  ;;  %v1238_v20 = vmul.f32 0.2, %v1222_v9 }
  0xbf   : > { %v677_v8 = vmax.f32 %v645_v58, %v661_v39  ;;  %v976_v46 = vmax.f32 %v944_v12, %v960_v0  ;;  %v545_v58 = vmul.f32 %v2597_v5, %v2672_v35  ;;  %v924_v0 = vmul.f32 %v2594_v4, %v2672_v35 }
  0xc0   : > { %v2666_v47 = vpop.permute.xlu1 %504  ;;  %v2668_v10 = vpop.permute.xlu0 %499  ;;  %v1253_v14 = vmax.f32 %v1221_v6, %v1237_v18  ;;  %v1254_v21 = vmax.f32 %v1222_v9, %v1238_v20 }
  0xc1   : > { %v546_v44 = vmul.f32 %v2597_v5, %v2668_v10  ;;  %v1203_v42 = vmul.f32 %v2587_v2, %v2668_v10  ;;  %v925_v1 = vmul.f32 %v2594_v4, %v2668_v10  ;;  %v687_v19 = vpack.c.bf16 %v677_v8, %v676_v16 }
  0xc2   : > { %v986_v13 = vpack.c.bf16 %v976_v46, %v975_v17  ;;  %v2686_v29 = vpack.c.bf16 %v1254_v21, %v1253_v14  ;;  %v547_v30 = vmul.f32 %v2597_v5, %v2666_v47  ;;  %v926_v36 = vmul.f32 %v2594_v4, %v2666_v47 }
  0xc3   : > { %820 = vmatpush.bf16.msra.mxu0 %v687_v19  ;;  %2023 = vmatpush.bf16.msra.mxu3 %v687_v19  ;;  %v1219_v22 = vadd.f32 %v1203_v42, %v2638_v28  ;;  %v642_v25 = vadd.f32 %v2638_v28, %v546_v44  ;;  %v941_v27 = vadd.f32 %v925_v1, %v2638_v28 }
  0xc4   : > { %991 = vmatpush.bf16.msra.mxu1 %v986_v13  ;;  %v1204_v43 = vmul.f32 %v2587_v2, %v2666_v47  ;;  %v1202_v44 = vmul.f32 %v2587_v2, %v2672_v35 }
  0xc5   : > { %1696 = vperm.xlu2 %2057, %v3198_v23   ;;  %v658_v45 = vmul.f32 0.2, %v642_v25  ;;  %v2701_v51 = vpop.permute.xlu2 %479  ;;  %v957_v52 = vmul.f32 0.2, %v941_v27  ;;  %v1235_v55 = vmul.f32 0.2, %v1219_v22 }
  0xc6   : > { %1741 = vperm.xlu1 %2056, %v2537_v34   ;;  %1691 = vperm.xlu0 %2055, %v3199_v26  }
  0xc7   : > { %v674_v12 = vmax.f32 %v642_v25, %v658_v45  ;;  %v973_v39 = vmax.f32 %v941_v27, %v957_v52  ;;  %v1251_v8 = vmax.f32 %v1219_v22, %v1235_v55 }
  0xc8   : > { %v2694_v31 = vpop.permute.xlu1 %489  ;;  %v2696_v37 = vpop.permute.xlu0 %601 }
  0xc9   : > { %v643_v34 = vadd.f32 %v2696_v37, %v547_v30  ;;  %v942_v38 = vadd.f32 %v926_v36, %v2696_v37  ;;  %v1220_v49 = vadd.f32 %v1204_v43, %v2696_v37  ;;  %v544_v62 = vmul.f32 %v2597_v5, %v2694_v31 }
  0xca   : > { %v923_v6 = vmul.f32 %v2594_v4, %v2694_v31  ;;  %v542_v43 = vmul.f32 %v2597_v5, %v2701_v51 }
  0xcb   : > { %v659_v53 = vmul.f32 0.2, %v643_v34  ;;  %v958_v54 = vmul.f32 0.2, %v942_v38  ;;  %v1236_v57 = vmul.f32 0.2, %v1220_v49 }
  0xcd   : > { %1756 = vperm.xlu2 %2057, %v2543_v33   ;;  %v675_v60 = vmax.f32 %v643_v34, %v659_v53  ;;  %v974_v61 = vmax.f32 %v942_v38, %v958_v54  ;;  %v1252_v63 = vmax.f32 %v1220_v49, %v1236_v57  ;;  %v2729_v21 = vpop.permute.xlu2 %581  ;;  %v921_v34 = vmul.f32 %v2594_v4, %v2701_v51 }
  0xce   : > { %1751 = vperm.xlu1 %2056, %v2541_v40   ;;  %1746 = vperm.xlu0 %2055, %v2539_v41   ;;  %v1201_v41 = vmul.f32 %v2587_v2, %v2694_v31 }
  0xcf   : > { %v686_v46 = vpack.c.bf16 %v675_v60, %v674_v12  ;;  %v985_v9 = vpack.c.bf16 %v974_v61, %v973_v39  ;;  %v2726_v19 = vpack.c.bf16 %v1252_v63, %v1251_v8  ;;  %v1199_v60 = vmul.f32 %v2587_v2, %v2701_v51 }
  0xd0   : > { %v2714_v7 = vpop.permute.xlu1 %591  ;;  %v2716_v33 = vpop.permute.xlu0 %586 }
  0xd1   : > { %v640_v16 = vadd.f32 %v2716_v33, %v544_v62  ;;  %v641_v40 = vadd.f32 %v2714_v7, %v545_v58  ;;  %v939_v17 = vadd.f32 %v923_v6, %v2716_v33  ;;  %v940_v18 = vadd.f32 %v924_v0, %v2714_v7  ;;  %821 = vmatpush.bf16.msra.mxu0 %v686_v46 }
  0xd2   : > { %2024 = vmatpush.bf16.msra.mxu3 %v686_v46  ;;  %992 = vmatpush.bf16.msra.mxu1 %v985_v9  ;;  %v1217_v14 = vadd.f32 %v1201_v41, %v2716_v33  ;;  %v1218_v25 = vadd.f32 %v1202_v44, %v2714_v7 }
  0xd3   : > { %v656_v42 = vmul.f32 0.2, %v640_v16  ;;  %v657_v1 = vmul.f32 0.2, %v641_v40  ;;  %v955_v13 = vmul.f32 0.2, %v939_v17 }
  0xd4   : > { %v956_v20 = vmul.f32 0.2, %v940_v18  ;;  %v1233_v36 = vmul.f32 0.2, %v1217_v14 }
  0xd5   : > { %v672_v22 = vmax.f32 %v640_v16, %v656_v42  ;;  %v673_v23 = vmax.f32 %v641_v40, %v657_v1  ;;  %v971_v26 = vmax.f32 %v939_v17, %v955_v13  ;;  %v2754_v46 = vpop.permute.xlu2 %566 }
  0xd6   : > { %v972_v27 = vmax.f32 %v940_v18, %v956_v20  ;;  %1761 = vperm.xlu0 %2055, %v2545_v32   ;;  %v1234_v32 = vmul.f32 0.2, %v1218_v25  ;;  %v1249_v12 = vmax.f32 %v1217_v14, %v1233_v36 }
  0xd7   : > { %v685_v30 = vpack.c.bf16 %v673_v23, %v672_v22 }
  0xd8   : > { %v2737_v45 = vpop.permute.xlu1 %576  ;;  %v2739_v38 = vpop.permute.xlu0 %484  ;;  %v984_v49 = vpack.c.bf16 %v972_v27, %v971_v26  ;;  %v1250_v6 = vmax.f32 %v1218_v25, %v1234_v32 }
  0xd9   : > { %v543_v52 = vmul.f32 %v2597_v5, %v2739_v38  ;;  %v922_v53 = vmul.f32 %v2594_v4, %v2739_v38  ;;  %822 = vmatpush.bf16.msra.mxu0 %v685_v30  ;;  %2025 = vmatpush.bf16.msra.mxu3 %v685_v30  ;;  %v638_v54 = vadd.f32 %v2737_v45, %v542_v43 }
  0xda   : > { %993 = vmatpush.bf16.msra.mxu1 %v984_v49  ;;  %v937_v55 = vadd.f32 %v921_v34, %v2737_v45  ;;  %v1200_v61 = vmul.f32 %v2587_v2, %v2739_v38  ;;  %v1215_v8 = vadd.f32 %v1199_v60, %v2737_v45  ;;  %v2756_v40 = vpack.c.bf16 %v1250_v6, %v1249_v12 }
  0xdb   : > { %v639_v57 = vadd.f32 %v2729_v21, %v543_v52  ;;  %v938_v58 = vadd.f32 %v922_v53, %v2729_v21  ;;  %v654_v62 = vmul.f32 0.2, %v638_v54 }
  0xdc   : > { %v953_v63 = vmul.f32 0.2, %v937_v55  ;;  %v1216_v18 = vadd.f32 %v1200_v61, %v2729_v21  ;;  %v1231_v1 = vmul.f32 0.2, %v1215_v8 }
  0xdd   : > { %v655_v39 = vmul.f32 0.2, %v639_v57  ;;  %v954_v0 = vmul.f32 0.2, %v938_v58  ;;  %v670_v44 = vmax.f32 %v638_v54, %v654_v62 }
  0xde   : > { %v969_v42 = vmax.f32 %v937_v55, %v953_v63  ;;  %v1232_v25 = vmul.f32 0.2, %v1216_v18  ;;  %v1247_v26 = vmax.f32 %v1215_v8, %v1231_v1  ;;  %v2784_v55 = vpop.permute.xlu2 %464 }
  0xdf   : > { %v671_v9 = vmax.f32 %v639_v57, %v655_v39  ;;  %v970_v16 = vmax.f32 %v938_v58, %v954_v0  ;;  %v1439_v0 = vmul.f32 %v2590_v3, %v2644_v48  ;;  %v539_v6 = vmul.f32 %v2597_v5, %v2784_v55 }
  0xe0   : > { %v2758_v41 = vpop.permute.xlu1 %474  ;;  %v2760_v17 = vpop.permute.xlu0 %469  ;;  %v1248_v27 = vmax.f32 %v1216_v18, %v1232_v25 }
  0xe1   : > { %v540_v13 = vmul.f32 %v2597_v5, %v2760_v17  ;;  %v919_v20 = vmul.f32 %v2594_v4, %v2760_v17  ;;  %v1197_v14 = vmul.f32 %v2587_v2, %v2760_v17  ;;  %v684_v22 = vpack.c.bf16 %v671_v9, %v670_v44 }
  0xe2   : > { %v983_v23 = vpack.c.bf16 %v970_v16, %v969_v42  ;;  %v2772_v34 = vpack.c.bf16 %v1248_v27, %v1247_v26  ;;  %v541_v49 = vmul.f32 %v2597_v5, %v2758_v41  ;;  %v920_v52 = vmul.f32 %v2594_v4, %v2758_v41 }
  0xe3   : > { %823 = vmatpush.bf16.msra.mxu0 %v684_v22  ;;  %2026 = vmatpush.bf16.msra.mxu3 %v684_v22  ;;  %v1213_v30 = vadd.f32 %v1197_v14, %v2754_v46  ;;  %v636_v36 = vadd.f32 %v2754_v46, %v540_v13  ;;  %v935_v43 = vadd.f32 %v919_v20, %v2754_v46 }
  0xe4   : > { %994 = vmatpush.bf16.msra.mxu1 %v983_v23  ;;  %v1198_v54 = vmul.f32 %v2587_v2, %v2758_v41  ;;  %v918_v42 = vmul.f32 %v2594_v4, %v2784_v55 }
  0xe5   : > { %v652_v58 = vmul.f32 0.2, %v636_v36  ;;  %v951_v60 = vmul.f32 0.2, %v935_v43  ;;  %v1229_v63 = vmul.f32 0.2, %v1213_v30 }
  0xe7   : > { %v668_v9 = vmax.f32 %v636_v36, %v652_v58  ;;  %v967_v18 = vmax.f32 %v935_v43, %v951_v60  ;;  %v1245_v26 = vmax.f32 %v1213_v30, %v1229_v63 }
  0xe8   : > { %v2778_v53 = vpop.permute.xlu1 %459  ;;  %v2780_v32 = vpop.permute.xlu0 %571 }
  0xe9   : > { %v637_v57 = vadd.f32 %v2780_v32, %v541_v49  ;;  %v936_v12 = vadd.f32 %v920_v52, %v2780_v32  ;;  %v1214_v61 = vadd.f32 %v1198_v54, %v2780_v32  ;;  %v538_v1 = vmul.f32 %v2597_v5, %v2778_v53 }
  0xea   : > { %v917_v13 = vmul.f32 %v2594_v4, %v2778_v53  ;;  %v1195_v48 = vmul.f32 %v2587_v2, %v2778_v53  ;;  %v1196_v4 = vmul.f32 %v2587_v2, %v2784_v55  ;;  %v1455_v49 = vadd.f32 %v1439_v0, %v2622_v50 }
  0xeb   : > { %v653_v62 = vmul.f32 0.2, %v637_v57  ;;  %v952_v39 = vmul.f32 0.2, %v936_v12  ;;  %v1230_v8 = vmul.f32 0.2, %v1214_v61  ;;  %v1436_v50 = vmul.f32 %v2590_v3, %v2668_v10 }
  0xec   : > { %v1435_v10 = vmul.f32 %v2590_v3, %v2672_v35 }
  0xed   : > { %v669_v16 = vmax.f32 %v637_v57, %v653_v62  ;;  %v968_v44 = vmax.f32 %v936_v12, %v952_v39  ;;  %v1246_v20 = vmax.f32 %v1214_v61, %v1230_v8  ;;  %v1437_v12 = vmul.f32 %v2590_v3, %v2666_v47  ;;  %v3201_v47 = vld [vmem:[#allocation5_spill] sm:$0xff] }
  0xee   : > { %v1451_v35 = vadd.f32 %v1435_v10, %v2714_v7  ;;  %v1432_v7 = vmul.f32 %v2590_v3, %v2701_v51  ;;  %v1429_v51 = vmul.f32 %v2590_v3, %v2784_v55 }
  0xef   : > { %v683_v23 = vpack.c.bf16 %v669_v16, %v668_v9  ;;  %v982_v25 = vpack.c.bf16 %v968_v44, %v967_v18  ;;  %v2812_v52 = vpack.c.bf16 %v1246_v20, %v1245_v26  ;;  %v1471_v9 = vmul.f32 0.2, %v1455_v49  ;;  %v3203_v20 = vld [vmem:[#allocation13_spill] sm:$0xff] }
  0xf0   : > { %v2801_v14 = vpop.permute.xlu1 %561  ;;  %v2803_v22 = vpop.permute.xlu0 %556  ;;  %v1453_v16 = vadd.f32 %v1437_v12, %v2696_v37  ;;  %v1470_v37 = vmul.f32 0.2, %v2660_v59  ;;  %v1452_v26 = vadd.f32 %v1436_v50, %v2638_v28 }
  0xf1   : > { %v634_v27 = vadd.f32 %v2803_v22, %v538_v1  ;;  %v635_v36 = vadd.f32 %v2801_v14, %v539_v6  ;;  %v933_v5 = vadd.f32 %v917_v13, %v2803_v22  ;;  %v934_v43 = vadd.f32 %v918_v42, %v2801_v14  ;;  %824 = vmatpush.bf16.msra.mxu0 %v683_v23  ;;  %v3200_v42 = vld [vmem:[#allocation4_spill] sm:$0xff] }
  0xf2   : > { %2027 = vmatpush.bf16.msra.mxu3 %v683_v23  ;;  %995 = vmatpush.bf16.msra.mxu1 %v982_v25  ;;  %v1211_v58 = vadd.f32 %v1195_v48, %v2803_v22  ;;  %v1212_v61 = vadd.f32 %v1196_v4, %v2801_v14  ;;  %v2823_v1 = vor.u32 %v3201_v47, %v3200_v42  ;;  %v3202_v13 = vld [vmem:[#allocation12_spill] sm:$0xff]  ;;  %v1468_v28 = vmul.f32 0.2, %v1452_v26 }
  0xf3   : > { %v650_v54 = vmul.f32 0.2, %v634_v27  ;;  %v651_v30 = vmul.f32 0.2, %v635_v36  ;;  %v949_v57 = vmul.f32 0.2, %v933_v5  ;;  %v2827_v48 = vor.u32 %v3203_v20, %v3202_v13 }
  0xf4   : > { %v950_v60 = vmul.f32 0.2, %v934_v43  ;;  %v1227_v63 = vmul.f32 0.2, %v1211_v58  ;;  %v1228_v6 = vmul.f32 0.2, %v1212_v61  ;;  %v1434_v25 = vmul.f32 %v2590_v3, %v2694_v31 }
  0xf5   : > { %v666_v62 = vmax.f32 %v634_v27, %v650_v54  ;;  %v667_v2 = vmax.f32 %v635_v36, %v651_v30  ;;  %v965_v39 = vmax.f32 %v933_v5, %v949_v57  ;;  %3204 = vst [vmem:[#allocation21_spill] sm:$0xff] %v2827_v48  ;;  %v1433_v36 = vmul.f32 %v2590_v3, %v2739_v38  ;;  %v3211_v20 = vld [vmem:[#allocation8_spill] sm:$0xff] }
  0xf6   : > { %v966_v0 = vmax.f32 %v934_v43, %v950_v60  ;;  %v1243_v18 = vmax.f32 %v1211_v58, %v1227_v63  ;;  %v1244_v23 = vmax.f32 %v1212_v61, %v1228_v6  ;;  %v1450_v5 = vadd.f32 %v1434_v25, %v2716_v33  ;;  %v3206_v63 = vld [vmem:[#allocation7_spill] sm:$0xff]  ;;  %v3214_v25 = vld [vmem:[#allocation16_spill] sm:$0xff] }
  0xf7   : > { %v682_v8 = vpack.c.bf16 %v667_v2, %v666_v62  ;;  %v1487_v31 = vmax.f32 %v1455_v49, %v1471_v9  ;;  %v1469_v43 = vmul.f32 0.2, %v1453_v16  ;;  %v1467_v54 = vmul.f32 0.2, %v1451_v35  ;;  %v3209_v6 = vld [vmem:[#allocation15_spill] sm:$0xff] }
  0xf8   : > { %v981_v44 = vpack.c.bf16 %v966_v0, %v965_v39  ;;  %v2836_v27 = vpack.c.bf16 %v1244_v23, %v1243_v18  ;;  %v1466_v4 = vmul.f32 0.2, %v1450_v5  ;;  %v1449_v38 = vadd.f32 %v1433_v36, %v2729_v21  ;;  %v3205_v39 = vld [vmem:[#allocation6_spill] sm:$0xff]  ;;  %v3212_v23 = vld [vmem:[#allocation9_spill] sm:$0xff] }
  0xf9   : > { %825 = vmatpush.bf16.msra.mxu0 %v682_v8  ;;  %2028 = vmatpush.bf16.msra.mxu3 %v682_v8  ;;  %v1485_v30 = vmax.f32 %v1453_v16, %v1469_v43  ;;  %v1431_v49 = vmul.f32 %v2590_v3, %v2758_v41  ;;  %v1430_v57 = vmul.f32 %v2590_v3, %v2760_v17  ;;  %v3208_v0 = vld [vmem:[#allocation14_spill] sm:$0xff]  ;;  %v3221_v43 = vld [vmem:[#allocation19_spill] sm:$0xff] }
  0xfa   : > { %996 = vmatpush.bf16.msra.mxu1 %v981_v44  ;;  %v1482_v58 = vmax.f32 %v1450_v5, %v1466_v4  ;;  %v1483_v12 = vmax.f32 %v1451_v35, %v1467_v54  ;;  %v1465_v60 = vmul.f32 0.2, %v1449_v38  ;;  %v1428_v62 = vmul.f32 %v2590_v3, %v2778_v53  ;;  %v3217_v36 = vld [vmem:[#allocation10_spill] sm:$0xff]  ;;  %v3218_v5 = vld [vmem:[#allocation11_spill] sm:$0xff]  ;;  %v2902_v4 = vpop.permute.xlu1 %752 }
  0xfb   : > { %v1447_v21 = vadd.f32 %v1431_v49, %v2780_v32  ;;  %v1446_v17 = vadd.f32 %v1430_v57, %v2754_v46  ;;  %v2867_v8 = vor.u32 %v3209_v6, %v3208_v0  ;;  %v1445_v9 = vadd.f32 %v1429_v51, %v2801_v14 }
  0xfc   : > { %826 = vmatmul.bf16.vlgmr.msra.gmra.mxu0 %v2823_v1  ;;  %846 = vmatmul.bf16.vlgmr.msra.gmra.mxu3 %v2827_v48  ;;  %v1495_v2 = vpack.c.bf16 %v1483_v12, %v1482_v58  ;;  %v1481_v50 = vmax.f32 %v1449_v38, %v1465_v60  ;;  %v1444_v55 = vadd.f32 %v1428_v62, %v2803_v22 }
  0xfd   : > { %1500 = vmatpush.bf16.msrb.mxu0 %v2631_v11  ;;  %997 = vmatmul.bf16.vlgmr.msra.gmra.mxu1 %v2823_v1  ;;  %v1486_v11 = vmax.f32 %v2660_v59, %v1470_v37  ;;  %v1448_v59 = vadd.f32 %v1432_v7, %v2737_v45  ;;  %v2863_v45 = vor.u32 %v3206_v63, %v3205_v39  ;;  %v1463_v32 = vmul.f32 0.2, %v1447_v21  ;;  %v3215_v37 = vld [vmem:[#allocation17_spill] sm:$0xff] }
  0xfe   : > { %3210 = vst [vmem:[#allocation4_spill] sm:$0xff] %v2867_v8  ;;  %v1462_v53 = vmul.f32 0.2, %v1446_v17  ;;  %v1460_v18 = vmul.f32 0.2, %v1444_v55  ;;  %v2876_v10 = vor.u32 %v3212_v23, %v3211_v20  ;;  %v2887_v35 = vor.u32 %v3218_v5, %v3217_v36 }
  0xff   : > { %v1497_v33 = vpack.c.bf16 %v1487_v31, %v1486_v11  ;;  %v1464_v41 = vmul.f32 0.2, %v1448_v59  ;;  %3207 = vst [vmem:[#allocation20_spill] sm:$0xff] %v2863_v45  ;;  %v1479_v16 = vmax.f32 %v1447_v21, %v1463_v32  ;;  %v1461_v44 = vmul.f32 0.2, %v1445_v9  ;;  %v3220_v31 = vld [vmem:[#allocation18_spill] sm:$0xff] }
 0x100   : > { %v1478_v42 = vmax.f32 %v1446_v17, %v1462_v53  ;;  %v1476_v13 = vmax.f32 %v1444_v55, %v1460_v18  ;;  %3213 = vst [vmem:[#allocation5_spill] sm:$0xff] %v2876_v10  ;;  %v2891_v11 = vor.u32 %v3221_v43, %v3220_v31 }
 0x101   : > { %1501 = vmatpush.bf16.msrb.mxu0 %v2654_v56  ;;  %v1484_v56 = vmax.f32 %v1452_v26, %v1468_v28  ;;  %v1480_v3 = vmax.f32 %v1448_v59, %v1464_v41  ;;  %v1477_v22 = vmax.f32 %v1445_v9, %v1461_v44  ;;  %v2880_v26 = vor.u32 %v3215_v37, %v3214_v25  ;;  %v2900_v28 = vpop.permute.xlu2 %762 }
 0x102   : > { %v1493_v47 = vpack.c.bf16 %v1479_v16, %v1478_v42  ;;  %3219 = vst [vmem:[#allocation13_spill] sm:$0xff] %v2887_v35  ;;  %v2908_v38 = vpop.permute.xlu1 %747 }
 0x103   : > { %v1496_v61 = vpack.c.bf16 %v1485_v30, %v1484_v56  ;;  %v1494_v46 = vpack.c.bf16 %v1481_v50, %v1480_v3  ;;  %v1492_v14 = vpack.c.bf16 %v1477_v22, %v1476_v13  ;;  %3216 = vst [vmem:[#allocation12_spill] sm:$0xff] %v2880_v26  ;;  %v2914_v30 = vpop.permute.xlu0 %767 }
 0x104   : > { %3222 = vst [vmem:[#allocation6_spill] sm:$0xff] %v2891_v11 }
 0x105   : > { %1502 = vmatpush.bf16.msrb.mxu0 %v1497_v33 }
 0x109   : > { %1503 = vmatpush.bf16.msrb.mxu0 %v1496_v61  ;;  %v2904_v54 = vpop.permute.xlu2 %757 }
 0x10a   : > { %v2912_v33 = vpop.permute.xlu1 %722 }
 0x10b   : > { %v2922_v56 = vpop.permute.xlu0 %742 }
 0x10c   : > { %831 = vmatmul.bf16.gmra.mxu0 %v2863_v45  ;;  %851 = vmatmul.bf16.gmra.mxu3 %v2867_v8 }
 0x10d   : > { %1504 = vmatpush.bf16.msrb.mxu0 %v1495_v2  ;;  %1002 = vmatmul.bf16.gmra.mxu1 %v2863_v45 }
 0x111   : > { %1505 = vmatpush.bf16.msrb.mxu0 %v1494_v46  ;;  %v2910_v7 = vpop.permute.xlu2 %732 }
 0x112   : > { %v2920_v57 = vpop.permute.xlu1 %717 }
 0x113   : > { %v2929_v61 = vpop.permute.xlu0 %737 }
 0x115   : > { %1506 = vmatpush.bf16.msrb.mxu0 %v1493_v47 }
 0x119   : > { %1507 = vmatpush.bf16.msrb.mxu0 %v1492_v14  ;;  %v2917_v49 = vpop.permute.xlu2 %727 }
 0x11a   : > { %v2927_v60 = vpop.permute.xlu1 %692 }
 0x11b   : > { %v2939_v16 = vpop.permute.xlu0 %712 }
 0x11c   : > { %836 = vmatmul.bf16.gmra.mxu0 %v2876_v10  ;;  %856 = vmatmul.bf16.gmra.mxu3 %v2880_v26 }
 0x11d   : > { %1007 = vmatmul.bf16.gmra.mxu1 %v2876_v10 }
 0x121   : > { %v2924_v59 = vpop.permute.xlu2 %702 }
 0x123   : > { %v2951_v20 = vpop.permute.xlu0 %707 }
 0x129   : > { %v2935_v41 = vpop.permute.xlu2 %697 }
 0x12c   : > { %841 = vmatmul.bf16.gmra.mxu0 %v2887_v35  ;;  %861 = vmatmul.bf16.gmra.mxu3 %v2891_v11 }
 0x12d   : > { %1012 = vmatmul.bf16.gmra.mxu1 %v2887_v35 }
 0x13c   : > { %1508 = vmatmul.bf16.vlgmr.msrb.gmra.mxu0 %v2823_v1 }
 0x13d   : > { %1017 = vmatmul.bf16.gmra.mxu1 %v2827_v48 }
 0x14c   : > { %1513 = vmatmul.bf16.gmra.mxu0 %v2863_v45 }
 0x14d   : > { %1022 = vmatmul.bf16.gmra.mxu1 %v2867_v8 }
 0x15c   : > { %1518 = vmatmul.bf16.gmra.mxu0 %v2876_v10 }
 0x15d   : > { %1027 = vmatmul.bf16.gmra.mxu1 %v2880_v26 }
 0x16c   : > { %1523 = vmatmul.bf16.gmra.mxu0 %v2887_v35 }
 0x16d   : > { %1032 = vmatmul.bf16.gmra.mxu1 %v2891_v11 }
 0x179   : > { %v827_v58 = vpop.f32.mrf.mxu0 }
 0x17a   : > { %v998_v12 = vpop.f32.mrf.mxu1  ;;  %v828_v21 = vadd.f32 %v827_v58, %v2927_v60 }
 0x17b   : > { %v999_v51 = vadd.f32 %v998_v12, %v2927_v60 }
 0x17c   : > { %1528 = vmatmul.bf16.gmra.mxu0 %v2827_v48  ;;  %v867_v2 = vmul.f32 0.2, %v828_v21 }
 0x17d   : > { %v1038_v50 = vmul.f32 0.2, %v999_v51 }
 0x17e   : > { %v883_v55 = vmax.f32 %v828_v21, %v867_v2 }
 0x17f   : > { %v2933_v62 = vpop.f32.mrf.mxu3  ;;  %v1054_v3 = vmax.f32 %v999_v51, %v1038_v50 }
 0x181   : > { %v829_v17 = vpop.f32.mrf.mxu0 }
 0x182   : > { %v830_v39 = vadd.f32 %v829_v17, %v2935_v41  ;;  %v1000_v63 = vpop.f32.mrf.mxu1 }
 0x183   : > { %v1001_v0 = vadd.f32 %v1000_v63, %v2935_v41 }
 0x184   : > { %v868_v6 = vmul.f32 0.2, %v830_v39 }
 0x185   : > { %v1039_v32 = vmul.f32 0.2, %v1001_v0 }
 0x186   : > { %v884_v9 = vmax.f32 %v830_v39, %v868_v6 }
 0x187   : > { %v1055_v53 = vmax.f32 %v1001_v0, %v1039_v32  ;;  %v849_v46 = vpop.f32.mrf.mxu3 }
 0x188   : > { %v2941_v18 = vpack.c.bf16 %v884_v9, %v883_v55 }
 0x189   : > { %v2943_v44 = vpop.f32.mrf.mxu0  ;;  %v2945_v42 = vpack.c.bf16 %v1055_v53, %v1054_v3 }
 0x18a   : > { %v1003_v47 = vpop.f32.mrf.mxu1 }
 0x18b   : > { %v1004_v13 = vadd.f32 %v1003_v47, %v2924_v59 }
 0x18c   : > { %1533 = vmatmul.bf16.gmra.mxu0 %v2867_v8 }
 0x18d   : > { %v1040_v25 = vmul.f32 0.2, %v1004_v13 }
 0x18f   : > { %v852_v22 = vpop.f32.mrf.mxu3  ;;  %v1056_v5 = vmax.f32 %v1004_v13, %v1040_v25 }
 0x191   : > { %v2949_v14 = vpop.f32.mrf.mxu0 }
 0x192   : > { %v1005_v23 = vpop.f32.mrf.mxu1 }
 0x193   : > { %v1006_v37 = vadd.f32 %v1005_v23, %v2951_v20 }
 0x195   : > { %v1041_v36 = vmul.f32 0.2, %v1006_v37 }
 0x197   : > { %v1057_v31 = vmax.f32 %v1006_v37, %v1041_v36  ;;  %v854_v43 = vpop.f32.mrf.mxu3 }
 0x199   : > { %v2954_v58 = vpop.f32.mrf.mxu0  ;;  %v2956_v12 = vpack.c.bf16 %v1057_v31, %v1056_v5 }
 0x19a   : > { %v1008_v21 = vpop.f32.mrf.mxu1 }
 0x19b   : > { %v1009_v51 = vadd.f32 %v1008_v21, %v2939_v16 }
 0x19c   : > { %1538 = vmatmul.bf16.gmra.mxu0 %v2880_v26 }
 0x19d   : > { %v1042_v63 = vmul.f32 0.2, %v1009_v51 }
 0x19f   : > { %v857_v17 = vpop.f32.mrf.mxu3  ;;  %v1058_v6 = vmax.f32 %v1009_v51, %v1042_v63 }
 0x1a1   : > { %v839_v2 = vpop.f32.mrf.mxu0 }
 0x1a2   : > { %v1010_v39 = vpop.f32.mrf.mxu1 }
 0x1a3   : > { %v1011_v50 = vadd.f32 %v1010_v39, %v2920_v57 }
 0x1a5   : > { %v1043_v0 = vmul.f32 0.2, %v1011_v50 }
 0x1a7   : > { %v1059_v32 = vmax.f32 %v1011_v50, %v1043_v0  ;;  %v859_v55 = vpop.f32.mrf.mxu3  ;;  %v858_v50 = vadd.f32 %v857_v17, %v2902_v4 }
 0x1a8   : > { %v860_v21 = vadd.f32 %v859_v55, %v2904_v54 }
 0x1a9   : > { %v842_v9 = vpop.f32.mrf.mxu0  ;;  %v2961_v3 = vpack.c.bf16 %v1059_v32, %v1058_v6  ;;  %v855_v32 = vadd.f32 %v854_v43, %v2908_v38  ;;  %v879_v55 = vmul.f32 0.2, %v858_v50 }
 0x1aa   : > { %v1013_v53 = vpop.f32.mrf.mxu1  ;;  %v880_v26 = vmul.f32 0.2, %v860_v21 }
 0x1ab   : > { %v1014_v47 = vadd.f32 %v1013_v53, %v2912_v33  ;;  %v878_v17 = vmul.f32 0.2, %v855_v32 }
 0x1ac   : > { %1543 = vmatmul.bf16.gmra.mxu0 %v2891_v11 }
 0x1ad   : > { %v1044_v37 = vmul.f32 0.2, %v1014_v47  ;;  %v894_v10 = vmax.f32 %v855_v32, %v878_v17 }
 0x1af   : > { %v862_v13 = vpop.f32.mrf.mxu3  ;;  %v1060_v51 = vmax.f32 %v1014_v47, %v1044_v37 }
 0x1b0   : > { %v863_v5 = vadd.f32 %v862_v13, %v2900_v28  ;;  %v853_v13 = vadd.f32 %v852_v22, %v2922_v56 }
 0x1b1   : > { %v844_v23 = vpop.f32.mrf.mxu0 }
 0x1b2   : > { %v1015_v25 = vpop.f32.mrf.mxu1  ;;  %v881_v0 = vmul.f32 0.2, %v863_v5  ;;  %v877_v43 = vmul.f32 0.2, %v853_v13  ;;  %v845_v22 = vadd.f32 %v844_v23, %v2917_v49 }
 0x1b3   : > { %v1016_v36 = vadd.f32 %v1015_v25, %v2917_v49 }
 0x1b4   : > { %v897_v47 = vmax.f32 %v863_v5, %v881_v0  ;;  %v874_v32 = vmul.f32 0.2, %v845_v22 }
 0x1b5   : > { %v1045_v31 = vmul.f32 0.2, %v1016_v36 }
 0x1b7   : > { %v1061_v39 = vmax.f32 %v1016_v36, %v1045_v31  ;;  %v864_v63 = vpop.f32.mrf.mxu3  ;;  %v850_v36 = vadd.f32 %v849_v46, %v2929_v61  ;;  %v896_v31 = vmax.f32 %v860_v21, %v880_v26  ;;  %v893_v21 = vmax.f32 %v853_v13, %v877_v43 }
 0x1b8   : > { %v865_v6 = vadd.f32 %v864_v63, %v2914_v30 }
 0x1b9   : > { %v1509_v53 = vpop.f32.mrf.mxu0  ;;  %v2971_v11 = vpack.c.bf16 %v1061_v39, %v1060_v51  ;;  %v848_v51 = vadd.f32 %v2933_v62, %v2910_v7  ;;  %v895_v39 = vmax.f32 %v858_v50, %v879_v55  ;;  %v876_v35 = vmul.f32 0.2, %v850_v36 }
 0x1ba   : > { %v882_v25 = vmul.f32 0.2, %v865_v6  ;;  %v2973_v8 = vpop.f32.mrf.mxu1  ;;  %v1510_v63 = vadd.f32 %v1509_v53, %v2927_v60  ;;  %v843_v53 = vadd.f32 %v842_v9, %v2912_v33  ;;  %v912_v50 = vpack.c.bf16 %v894_v10, %v893_v21 }
 0x1bb   : > { %v913_v26 = vpack.c.bf16 %v896_v31, %v895_v39  ;;  %v892_v62 = vmax.f32 %v850_v36, %v876_v35  ;;  %v835_v9 = vadd.f32 %v2949_v14, %v2951_v20  ;;  %v890_v35 = vmax.f32 %v845_v22, %v874_v32 }
 0x1bc   : > { %v898_v37 = vmax.f32 %v865_v6, %v882_v25  ;;  %v1549_v5 = vmul.f32 0.2, %v1510_v63  ;;  %v875_v6 = vmul.f32 0.2, %v848_v51  ;;  %v873_v17 = vmul.f32 0.2, %v843_v53 }
 0x1be   : > { %v914_v48 = vpack.c.bf16 %v898_v37, %v897_v47  ;;  %v1565_v55 = vmax.f32 %v1510_v63, %v1549_v5  ;;  %v891_v23 = vmax.f32 %v848_v51, %v875_v6  ;;  %v838_v37 = vadd.f32 %v2954_v58, %v2939_v16 }
 0x1bf   : > { %v889_v43 = vmax.f32 %v843_v53, %v873_v17  ;;  %v870_v51 = vmul.f32 0.2, %v835_v9 }
 0x1c0   : > { %1164 = vmatpush.bf16.msrb.mxu3 %v914_v48  ;;  %v840_v48 = vadd.f32 %v839_v2, %v2920_v57  ;;  %v911_v36 = vpack.c.bf16 %v892_v62, %v891_v23  ;;  %v833_v2 = vadd.f32 %v2943_v44, %v2924_v59  ;;  %v871_v63 = vmul.f32 0.2, %v838_v37 }
 0x1c1   : > { %v1511_v45 = vpop.f32.mrf.mxu0  ;;  %v910_v5 = vpack.c.bf16 %v890_v35, %v889_v43  ;;  %v886_v14 = vmax.f32 %v835_v9, %v870_v51 }
 0x1c2   : > { %v2981_v0 = vpop.f32.mrf.mxu1  ;;  %v1512_v46 = vadd.f32 %v1511_v45, %v2935_v41  ;;  %v872_v31 = vmul.f32 0.2, %v840_v48 }
 0x1c4   : > { %v1550_v25 = vmul.f32 0.2, %v1512_v46  ;;  %1165 = vmatpush.bf16.msrb.mxu3 %v913_v26  ;;  %v888_v58 = vmax.f32 %v840_v48, %v872_v31  ;;  %v887_v26 = vmax.f32 %v838_v37, %v871_v63 }
 0x1c6   : > { %v1566_v47 = vmax.f32 %v1512_v46, %v1550_v25  ;;  %v869_v46 = vmul.f32 0.2, %v833_v2  ;;  %v909_v62 = vpack.c.bf16 %v888_v58, %v887_v26 }
 0x1c8   : > { %1166 = vmatpush.bf16.msrb.mxu3 %v912_v50  ;;  %v2988_v45 = vpack.c.bf16 %v1566_v47, %v1565_v55  ;;  %v885_v50 = vmax.f32 %v833_v2, %v869_v46 }
 0x1c9   : > { %v1514_v13 = vpop.f32.mrf.mxu0 }
 0x1ca   : > { %v1023_v10 = vpop.f32.mrf.mxu1  ;;  %v1515_v39 = vadd.f32 %v1514_v13, %v2924_v59  ;;  %v908_v55 = vpack.c.bf16 %v886_v14, %v885_v50 }
 0x1cc   : > { %1167 = vmatpush.bf16.msrb.mxu3 %v911_v36  ;;  %v1551_v6 = vmul.f32 0.2, %v1515_v39 }
 0x1ce   : > { %v1567_v53 = vmax.f32 %v1515_v39, %v1551_v6 }
 0x1d0   : > { %1168 = vmatpush.bf16.msrb.mxu3 %v910_v5 }
 0x1d1   : > { %v1516_v21 = vpop.f32.mrf.mxu0 }
 0x1d2   : > { %v1025_v22 = vpop.f32.mrf.mxu1  ;;  %v1517_v25 = vadd.f32 %v1516_v21, %v2951_v20 }
 0x1d3   : > { %v1026_v50 = vadd.f32 %v1025_v22, %v2908_v38  ;;  %v2005_v22 = vld [vmem:[%s3168_s5] sm:$0xff] }
 0x1d4   : > { %v1552_v44 = vmul.f32 0.2, %v1517_v25  ;;  %1169 = vmatpush.bf16.msrb.mxu3 %v909_v62 }
 0x1d6   : > { %v1568_v32 = vmax.f32 %v1517_v25, %v1552_v44 }
 0x1d8   : > { %1170 = vmatpush.bf16.msrb.mxu3 %v908_v55  ;;  %v2996_v48 = vpack.c.bf16 %v1568_v32, %v1567_v53 }
 0x1d9   : > { %v1519_v47 = vpop.f32.mrf.mxu0 }
 0x1da   : > { %v1028_v23 = vpop.f32.mrf.mxu1  ;;  %v1520_v37 = vadd.f32 %v1519_v47, %v2939_v16  ;;  %v1024_v47 = vadd.f32 %v1023_v10, %v2922_v56  ;;  %v1019_v10 = vadd.f32 %v2973_v8, %v2910_v7  ;;  %v2006_v8 = vld [vmem:[%s3168_s5 + $0x8] sm:$0xff] }
 0x1db   : > { %v1029_v14 = vadd.f32 %v1028_v23, %v2902_v4  ;;  %v1021_v23 = vadd.f32 %v2981_v0, %v2929_v61 }
 0x1dc   : > { %1171 = vmatpush.bf16.msrb.mxu3 %v2941_v18  ;;  %v1553_v13 = vmul.f32 0.2, %v1520_v37  ;;  %v1046_v0 = vmul.f32 0.2, %v1019_v10 }
 0x1de   : > { %v1569_v36 = vmax.f32 %v1520_v37, %v1553_v13  ;;  %v1050_v37 = vmul.f32 0.2, %v1029_v14 }
 0x1df   : > { %1172 = vmatmul.bf16.vlgmr.msrb.gmra.mxu3 %v2005_v22 }
 0x1e1   : > { %v1521_v17 = vpop.f32.mrf.mxu0 }
 0x1e2   : > { %v1030_v9 = vpop.f32.mrf.mxu1  ;;  %v1522_v31 = vadd.f32 %v1521_v17, %v2920_v57 }
 0x1e3   : > { %v1031_v18 = vadd.f32 %v1030_v9, %v2904_v54 }
 0x1e4   : > { %v1554_v35 = vmul.f32 0.2, %v1522_v31 }
 0x1e5   : > { %v1051_v44 = vmul.f32 0.2, %v1031_v18 }
 0x1e6   : > { %v1570_v2 = vmax.f32 %v1522_v31, %v1554_v35  ;;  %v1049_v31 = vmul.f32 0.2, %v1026_v50 }
 0x1e7   : > { %v1067_v35 = vmax.f32 %v1031_v18, %v1051_v44 }
 0x1e8   : > { %v3001_v63 = vpack.c.bf16 %v1570_v2, %v1569_v36 }
 0x1e9   : > { %v1524_v43 = vpop.f32.mrf.mxu0 }
 0x1ea   : > { %v1033_v51 = vpop.f32.mrf.mxu1  ;;  %v1525_v58 = vadd.f32 %v1524_v43, %v2912_v33  ;;  %v1048_v43 = vmul.f32 0.2, %v1024_v47 }
 0x1eb   : > { %v1034_v39 = vadd.f32 %v1033_v51, %v2900_v28  ;;  %v1066_v51 = vmax.f32 %v1029_v14, %v1050_v37 }
 0x1ec   : > { %v1555_v46 = vmul.f32 0.2, %v1525_v58 }
 0x1ed   : > { %v1052_v6 = vmul.f32 0.2, %v1034_v39 }
 0x1ee   : > { %v1571_v32 = vmax.f32 %v1525_v58, %v1555_v46  ;;  %v1047_v58 = vmul.f32 0.2, %v1021_v23  ;;  %v1064_v46 = vmax.f32 %v1024_v47, %v1048_v43 }
 0x1ef   : > { %v1068_v17 = vmax.f32 %v1034_v39, %v1052_v6  ;;  %v1065_v39 = vmax.f32 %v1026_v50, %v1049_v31  ;;  %v1062_v6 = vmax.f32 %v1019_v10, %v1046_v0  ;;  %1177 = vmatmul.bf16.gmra.mxu3 %v2006_v8  ;;  %v2009_v50 = vld [vmem:[%s3168_s5 + $0x20] sm:$0xff] }
 0x1f0   : > { %v1063_v18 = vmax.f32 %v1021_v23, %v1047_v58 }
 0x1f1   : > { %v1526_v5 = vpop.f32.mrf.mxu0 }
 0x1f2   : > { %v1035_v26 = vpop.f32.mrf.mxu1  ;;  %v1527_v21 = vadd.f32 %v1526_v5, %v2917_v49  ;;  %v1085_v5 = vpack.c.bf16 %v1067_v35, %v1066_v51 }
 0x1f3   : > { %v1036_v25 = vadd.f32 %v1035_v26, %v2914_v30 }
 0x1f4   : > { %v1556_v62 = vmul.f32 0.2, %v1527_v21 }
 0x1f5   : > { %v1053_v53 = vmul.f32 0.2, %v1036_v25 }
 0x1f6   : > { %v1572_v55 = vmax.f32 %v1527_v21, %v1556_v62  ;;  %v1084_v21 = vpack.c.bf16 %v1065_v39, %v1064_v46 }
 0x1f7   : > { %v1069_v13 = vmax.f32 %v1036_v25, %v1053_v53  ;;  %v1083_v25 = vpack.c.bf16 %v1063_v18, %v1062_v6  ;;  %v3223_v6 = vld [vmem:[#allocation20_spill] sm:$0xff] }
 0x1f8   : > { %v3011_v9 = vpack.c.bf16 %v1572_v55, %v1571_v32 }
 0x1f9   : > { %v3015_v36 = vpop.f32.mrf.mxu0  ;;  %v1086_v2 = vpack.c.bf16 %v1069_v13, %v1068_v17 }
 0x1fa   : > { %v1530_v10 = vadd.f32 %v3015_v36, %v2910_v7  ;;  %v2012_v36 = vld [vmem:[%s3168_s5 + $0x38] sm:$0xff] }
 0x1fb   : > { %1111 = vmatpush.bf16.msra.mxu2 %v1086_v2 }
 0x1ff   : > { %1112 = vmatpush.bf16.msra.mxu2 %v1085_v5  ;;  %v1557_v5 = vmul.f32 0.2, %v1530_v10 }
 0x201   : > { %v1531_v26 = vpop.f32.mrf.mxu0 }
 0x202   : > { %v1532_v31 = vadd.f32 %v1531_v26, %v2929_v61 }
 0x203   : > { %1113 = vmatpush.bf16.msra.mxu2 %v1084_v21  ;;  %v1573_v21 = vmax.f32 %v1530_v10, %v1557_v5 }
 0x207   : > { %1114 = vmatpush.bf16.msra.mxu2 %v1083_v25  ;;  %v3224_v25 = vld [vmem:[#allocation5_spill] sm:$0xff] }
 0x209   : > { %v1534_v62 = vpop.f32.mrf.mxu0 }
 0x20b   : > { %1115 = vmatpush.bf16.msra.mxu2 %v2971_v11  ;;  %v2007_v11 = vld [vmem:[%s3168_s5 + $0x10] sm:$0xff] }
 0x20c   : > { %1182 = vmatmul.bf16.gmra.mxu3 %v2007_v11 }
 0x20f   : > { %1116 = vmatpush.bf16.msra.mxu2 %v2961_v3  ;;  %v2008_v3 = vld [vmem:[%s3168_s5 + $0x18] sm:$0xff] }
 0x211   : > { %v1536_v14 = vpop.f32.mrf.mxu0 }
 0x212   : > { %v1537_v55 = vadd.f32 %v1536_v14, %v2908_v38 }
 0x213   : > { %1117 = vmatpush.bf16.msra.mxu2 %v2956_v12 }
 0x214   : > { %v1560_v35 = vmul.f32 0.2, %v1537_v55 }
 0x216   : > { %v1576_v58 = vmax.f32 %v1537_v55, %v1560_v35 }
 0x217   : > { %1118 = vmatpush.bf16.msra.mxu2 %v2945_v42  ;;  %v2010_v42 = vld [vmem:[%s3168_s5 + $0x28] sm:$0xff] }
 0x219   : > { %v1539_v44 = vpop.f32.mrf.mxu0 }
 0x21a   : > { %1119 = vmatmul.bf16.vlgmr.msra.gmra.mxu2 %v2009_v50  ;;  %v1540_v53 = vadd.f32 %v1539_v44, %v2902_v4  ;;  %v3226_v50 = vld [vmem:[#allocation21_spill] sm:$0xff] }
 0x21b   : > { %1267 = vmatpush.bf16.msrb.mxu2 %v2634_v24 }
 0x21c   : > { %1187 = vmatmul.bf16.gmra.mxu3 %v2008_v3  ;;  %v1561_v17 = vmul.f32 0.2, %v1540_v53 }
 0x21e   : > { %v1577_v51 = vmax.f32 %v1540_v53, %v1561_v17 }
 0x21f   : > { %1268 = vmatpush.bf16.msrb.mxu2 %v2670_v15 }
 0x221   : > { %v1541_v12 = vpop.f32.mrf.mxu0 }
 0x223   : > { %1269 = vmatpush.bf16.msrb.mxu2 %v2686_v29  ;;  %v1542_v29 = vadd.f32 %v1541_v12, %v2904_v54 }
 0x225   : > { %v1562_v47 = vmul.f32 0.2, %v1542_v29 }
 0x227   : > { %1270 = vmatpush.bf16.msrb.mxu2 %v2726_v19  ;;  %v1578_v2 = vmax.f32 %v1542_v29, %v1562_v47  ;;  %v3228_v29 = vld [vmem:[#allocation12_spill] sm:$0xff]  ;;  %v3229_v47 = vld [vmem:[#allocation6_spill] sm:$0xff] }
 0x229   : > { %v1544_v24 = vpop.f32.mrf.mxu0  ;;  %v1596_v39 = vpack.c.bf16 %v1578_v2, %v1577_v51 }
 0x22a   : > { %1124 = vmatmul.bf16.gmra.mxu2 %v2010_v42  ;;  %v1545_v15 = vadd.f32 %v1544_v24, %v2900_v28 }
 0x22b   : > { %1271 = vmatpush.bf16.msrb.mxu2 %v2756_v40 }
 0x22c   : > { %v1563_v32 = vmul.f32 0.2, %v1545_v15 }
 0x22e   : > { %v1579_v13 = vmax.f32 %v1545_v15, %v1563_v32 }
 0x22f   : > { %1272 = vmatpush.bf16.msrb.mxu2 %v2772_v34  ;;  %v1535_v34 = vadd.f32 %v1534_v62, %v2922_v56  ;;  %v3225_v62 = vld [vmem:[#allocation13_spill] sm:$0xff] }
 0x231   : > { %v1546_v19 = vpop.f32.mrf.mxu0  ;;  %v1559_v43 = vmul.f32 0.2, %v1535_v34 }
 0x232   : > { %v1547_v40 = vadd.f32 %v1546_v19, %v2914_v30 }
 0x233   : > { %1273 = vmatpush.bf16.msrb.mxu2 %v2812_v52  ;;  %v2011_v52 = vld [vmem:[%s3168_s5 + $0x30] sm:$0xff]  ;;  %v1575_v0 = vmax.f32 %v1535_v34, %v1559_v43 }
 0x234   : > { %v1564_v37 = vmul.f32 0.2, %v1547_v40 }
 0x235   : > { %v1595_v18 = vpack.c.bf16 %v1576_v58, %v1575_v0 }
 0x236   : > { %v1580_v23 = vmax.f32 %v1547_v40, %v1564_v37 }
 0x237   : > { %1274 = vmatpush.bf16.msrb.mxu2 %v2836_v27  ;;  %v1558_v27 = vmul.f32 0.2, %v1532_v31 }
 0x238   : > { %v1597_v22 = vpack.c.bf16 %v1580_v23, %v1579_v13 }
 0x239   : > { %v1574_v46 = vmax.f32 %v1532_v31, %v1558_v27 }
 0x23a   : > { %1129 = vmatmul.bf16.gmra.mxu2 %v2011_v52  ;;  %1622 = vmatpush.bf16.msrb.mxu1 %v1597_v22 }
 0x23b   : > { %v1594_v26 = vpack.c.bf16 %v1574_v46, %v1573_v21 }
 0x23e   : > { %1623 = vmatpush.bf16.msrb.mxu1 %v1596_v39 }
 0x242   : > { %1624 = vmatpush.bf16.msrb.mxu1 %v1595_v18 }
 0x246   : > { %1625 = vmatpush.bf16.msrb.mxu1 %v1594_v26 }
 0x24a   : > { %1134 = vmatmul.bf16.gmra.mxu2 %v2012_v36  ;;  %1626 = vmatpush.bf16.msrb.mxu1 %v3011_v9 }
 0x24e   : > { %1627 = vmatpush.bf16.msrb.mxu1 %v3001_v63 }
 0x252   : > { %1628 = vmatpush.bf16.msrb.mxu1 %v2996_v48 }
 0x256   : > { %1629 = vmatpush.bf16.msrb.mxu1 %v2988_v45  ;;  %v3227_v45 = vld [vmem:[#allocation4_spill] sm:$0xff] }
 0x25a   : > { %1275 = vmatmul.bf16.vlgmr.msrb.gmra.mxu2 %v2823_v1 }
 0x262   : > { %v1173_v8 = vpop.f32.mrf.mxu3 }
 0x26a   : > { %1280 = vmatmul.bf16.gmra.mxu2 %v3223_v6  ;;  %v1175_v14 = vpop.f32.mrf.mxu3 }
 0x272   : > { %v1178_v63 = vpop.f32.mrf.mxu3 }
 0x27a   : > { %1285 = vmatmul.bf16.gmra.mxu2 %v3224_v25  ;;  %v1180_v12 = vpop.f32.mrf.mxu3 }
 0x28a   : > { %1290 = vmatmul.bf16.gmra.mxu2 %v3225_v62 }
 0x28f   : > { %v1183_v15 = vpop.f32.mrf.mxu3 }
 0x297   : > { %v1185_v32 = vpop.f32.mrf.mxu3 }
 0x29a   : > { %1295 = vmatmul.bf16.gmra.mxu2 %v3226_v50 }
 0x29d   : > { %v1120_v44 = vpop.f32.mrf.mxu2 }
 0x29e   : > { %v3073_v9 = vadd.f32 %v1173_v8, %v1120_v44 }
 0x29f   : > { %v1188_v37 = vpop.f32.mrf.mxu3 }
 0x2a5   : > { %v1122_v11 = vpop.f32.mrf.mxu2 }
 0x2a6   : > { %v3075_v48 = vadd.f32 %v1175_v14, %v1122_v11 }
 0x2aa   : > { %1300 = vmatmul.bf16.gmra.mxu2 %v3227_v45 }
 0x2ad   : > { %v1125_v1 = vpop.f32.mrf.mxu2 }
 0x2ae   : > { %v3078_v42 = vadd.f32 %v1178_v63, %v1125_v1 }
 0x2b5   : > { %v1127_v24 = vpop.f32.mrf.mxu2 }
 0x2b6   : > { %v3080_v3 = vadd.f32 %v1180_v12, %v1127_v24 }
 0x2ba   : > { %1305 = vmatmul.bf16.gmra.mxu2 %v3228_v29 }
 0x2bd   : > { %v1130_v19 = vpop.f32.mrf.mxu2 }
 0x2be   : > { %v3083_v53 = vadd.f32 %v1183_v15, %v1130_v19 }
 0x2c5   : > { %v1132_v40 = vpop.f32.mrf.mxu2 }
 0x2c6   : > { %v3085_v55 = vadd.f32 %v1185_v32, %v1132_v40 }
 0x2ca   : > { %1310 = vmatmul.bf16.gmra.mxu2 %v3229_v47 }
 0x2cd   : > { %v1135_v34 = vpop.f32.mrf.mxu2 }
 0x2ce   : > { %v3088_v17 = vadd.f32 %v1188_v37, %v1135_v34 }
 0x2d5   : > { %v3090_v13 = vpop.f32.mrf.mxu2 }
 0x2dd   : > { %v1276_v23 = vpop.f32.mrf.mxu2 }
 0x2de   : > { %v1277_v52 = vadd.f32 %v1276_v23, %v2927_v60 }
 0x2e0   : > { %v1316_v35 = vmul.f32 0.2, %v1277_v52 }
 0x2e2   : > { %v1332_v10 = vmax.f32 %v1277_v52, %v1316_v35 }
 0x2e5   : > { %v1278_v31 = vpop.f32.mrf.mxu2 }
 0x2e6   : > { %v1279_v2 = vadd.f32 %v1278_v31, %v2935_v41 }
 0x2e8   : > { %v1317_v22 = vmul.f32 0.2, %v1279_v2 }
 0x2ea   : > { %v1333_v43 = vmax.f32 %v1279_v2, %v1317_v22 }
 0x2ec   : > { %v3094_v51 = vpack.c.bf16 %v1333_v43, %v1332_v10 }
 0x2ed   : > { %v1281_v27 = vpop.f32.mrf.mxu2 }
 0x2ee   : > { %v1282_v58 = vadd.f32 %v1281_v27, %v2924_v59 }
 0x2f0   : > { %v1318_v5 = vmul.f32 0.2, %v1282_v58 }
 0x2f2   : > { %v1334_v18 = vmax.f32 %v1282_v58, %v1318_v5 }
 0x2f5   : > { %v1283_v39 = vpop.f32.mrf.mxu2 }
 0x2f6   : > { %v1284_v0 = vadd.f32 %v1283_v39, %v2951_v20 }
 0x2f8   : > { %v1319_v46 = vmul.f32 0.2, %v1284_v0 }
 0x2fa   : > { %v1335_v21 = vmax.f32 %v1284_v0, %v1319_v46 }
 0x2fc   : > { %v3098_v60 = vpack.c.bf16 %v1335_v21, %v1334_v18 }
 0x2fd   : > { %v1286_v26 = vpop.f32.mrf.mxu2 }
 0x2fe   : > { %v1287_v41 = vadd.f32 %v1286_v26, %v2939_v16 }
 0x300   : > { %v1320_v6 = vmul.f32 0.2, %v1287_v41 }
 0x302   : > { %v1336_v8 = vmax.f32 %v1287_v41, %v1320_v6  ;;  %v2019_v6 = vld [vmem:[%s3168_s5 + $0x70] sm:$0xff] }
 0x305   : > { %v1288_v36 = vpop.f32.mrf.mxu2 }
 0x306   : > { %v1289_v25 = vadd.f32 %v1288_v36, %v2920_v57  ;;  %v2013_v36 = vld [vmem:[%s3168_s5 + $0x40] sm:$0xff] }
 0x308   : > { %v1321_v62 = vmul.f32 0.2, %v1289_v25 }
 0x30a   : > { %v1337_v14 = vmax.f32 %v1289_v25, %v1321_v62  ;;  %v2014_v25 = vld [vmem:[%s3168_s5 + $0x48] sm:$0xff]  ;;  %v2016_v62 = vld [vmem:[%s3168_s5 + $0x58] sm:$0xff] }
 0x30c   : > { %v1359_v59 = vpack.c.bf16 %v1337_v14, %v1336_v8  ;;  %v3138_v14 = vpop.f32.mrf.mxu3 }
 0x30d   : > { %v1291_v50 = vpop.f32.mrf.mxu2 }
 0x30e   : > { %v1292_v44 = vadd.f32 %v1291_v50, %v2912_v33 }
 0x310   : > { %v1322_v63 = vmul.f32 0.2, %v1292_v44 }
 0x312   : > { %v1338_v1 = vmax.f32 %v1292_v44, %v1322_v63 }
 0x315   : > { %v1293_v20 = vpop.f32.mrf.mxu2 }
 0x316   : > { %v1294_v11 = vadd.f32 %v1293_v20, %v2917_v49 }
 0x318   : > { %v1323_v45 = vmul.f32 0.2, %v1294_v11 }
 0x31a   : > { %v1339_v12 = vmax.f32 %v1294_v11, %v1323_v45  ;;  %v1667_v11 = vpop.permute.xlu1 %1666  ;;  %v1672_v45 = vpop.permute.xlu2 %1671 }
 0x31c   : > { %v1360_v24 = vpack.c.bf16 %v1339_v12, %v1338_v1 }
 0x31d   : > { %v1296_v16 = vpop.f32.mrf.mxu2 }
 0x325   : > { %v1298_v15 = vpop.f32.mrf.mxu2 }
 0x326   : > { %v1299_v27 = vadd.f32 %v1298_v15, %v2929_v61 }
 0x328   : > { %v1325_v5 = vmul.f32 0.2, %v1299_v27 }
 0x32a   : > { %v1341_v61 = vmax.f32 %v1299_v27, %v1325_v5 }
 0x32d   : > { %v1301_v29 = vpop.f32.mrf.mxu2 }
 0x32e   : > { %v1302_v2 = vadd.f32 %v1301_v29, %v2922_v56 }
 0x330   : > { %v1326_v39 = vmul.f32 0.2, %v1302_v2 }
 0x332   : > { %v1342_v18 = vmax.f32 %v1302_v2, %v1326_v39 }
 0x335   : > { %v1303_v19 = vpop.f32.mrf.mxu2 }
 0x336   : > { %v1304_v52 = vadd.f32 %v1303_v19, %v2908_v38 }
 0x33d   : > { %v1306_v57 = vpop.f32.mrf.mxu2 }
 0x33e   : > { %v1307_v34 = vadd.f32 %v1306_v57, %v2902_v4  ;;  %v2017_v4 = vld [vmem:[%s3168_s5 + $0x60] sm:$0xff] }
 0x33f   : > { %1630 = vmatmul.bf16.vlgmr.msrb.gmra.mxu1 %v2017_v4 }
 0x340   : > { %v1328_v22 = vmul.f32 0.2, %v1307_v34 }
 0x342   : > { %v1344_v38 = vmax.f32 %v1307_v34, %v1328_v22 }
 0x345   : > { %v1308_v32 = vpop.f32.mrf.mxu2 }
 0x346   : > { %v1309_v37 = vadd.f32 %v1308_v32, %v2904_v54  ;;  %v1682_v32 = vpop.permute.xlu1 %1681 }
 0x348   : > { %v1329_v31 = vmul.f32 0.2, %v1309_v37 }
 0x34a   : > { %v1345_v58 = vmax.f32 %v1309_v37, %v1329_v31  ;;  %v1727_v37 = vpop.permute.xlu2 %1726 }
 0x34c   : > { %v1363_v0 = vpack.c.bf16 %v1345_v58, %v1344_v38 }
 0x34d   : > { %v1311_v40 = vpop.f32.mrf.mxu2 }
 0x34e   : > { %v1312_v47 = vadd.f32 %v1311_v40, %v2900_v28  ;;  %v1327_v28 = vmul.f32 0.2, %v1304_v52 }
 0x350   : > { %v1330_v23 = vmul.f32 0.2, %v1312_v47  ;;  %v1343_v56 = vmax.f32 %v1304_v52, %v1327_v28 }
 0x352   : > { %v1346_v10 = vmax.f32 %v1312_v47, %v1330_v23  ;;  %v1362_v21 = vpack.c.bf16 %v1343_v56, %v1342_v18  ;;  %v1737_v58 = vpop.permute.xlu2 %1736 }
 0x355   : > { %v1313_v33 = vpop.f32.mrf.mxu2 }
 0x356   : > { %v1314_v49 = vadd.f32 %v1313_v33, %v2914_v30  ;;  %v1297_v30 = vadd.f32 %v1296_v16, %v2910_v7  ;;  %v2018_v7 = vld [vmem:[%s3168_s5 + $0x68] sm:$0xff] }
 0x357   : > { %1635 = vmatmul.bf16.gmra.mxu1 %v2018_v7 }
 0x358   : > { %v1331_v35 = vmul.f32 0.2, %v1314_v49  ;;  %v1324_v46 = vmul.f32 0.2, %v1297_v30 }
 0x35a   : > { %v1347_v43 = vmax.f32 %v1314_v49, %v1331_v35  ;;  %v1340_v26 = vmax.f32 %v1297_v30, %v1324_v46 }
 0x35c   : > { %v1364_v54 = vpack.c.bf16 %v1347_v43, %v1346_v10  ;;  %v1361_v41 = vpack.c.bf16 %v1341_v61, %v1340_v26 }
 0x35e   : > { %1389 = vmatpush.bf16.msra.mxu3 %v1364_v54 }
 0x362   : > { %1390 = vmatpush.bf16.msra.mxu3 %v1363_v0 }
 0x366   : > { %1391 = vmatpush.bf16.msra.mxu3 %v1362_v21 }
 0x367   : > { %1640 = vmatmul.bf16.gmra.mxu1 %v2019_v6 }
 0x36a   : > { %1392 = vmatpush.bf16.msra.mxu3 %v1361_v41 }
 0x36e   : > { %1393 = vmatpush.bf16.msra.mxu3 %v1360_v24 }
 0x372   : > { %1394 = vmatpush.bf16.msra.mxu3 %v1359_v59  ;;  %v1662_v59 = vpop.permute.xlu0 %1661 }
 0x376   : > { %1395 = vmatpush.bf16.msra.mxu3 %v3098_v60  ;;  %v2020_v60 = vld [vmem:[%s3168_s5 + $0x78] sm:$0xff] }
 0x377   : > { %1645 = vmatmul.bf16.gmra.mxu1 %v2020_v60 }
 0x37a   : > { %1396 = vmatpush.bf16.msra.mxu3 %v3094_v51  ;;  %v2015_v51 = vld [vmem:[%s3168_s5 + $0x50] sm:$0xff]  ;;  %v1677_v1 = vpop.permute.xlu0 %1676 }
 0x37d   : > { %1397 = vmatmul.bf16.vlgmr.msra.gmra.mxu3 %v2013_v36 }
 0x382   : > { %v1732_v23 = vpop.permute.xlu0 %1731 }
 0x38a   : > { %v1692_v5 = vpop.permute.xlu0 %1691 }
 0x38d   : > { %1402 = vmatmul.bf16.gmra.mxu3 %v2014_v25 }
 0x392   : > { %v1747_v60 = vpop.permute.xlu0 %1746 }
 0x39d   : > { %1407 = vmatmul.bf16.gmra.mxu3 %v2015_v51 }
 0x3ad   : > { %1412 = vmatmul.bf16.gmra.mxu3 %v2016_v62 }
 0x3bc   : > { %v1631_v8 = vpop.f32.mrf.mxu1 }
 0x3c4   : > { %v1633_v50 = vpop.f32.mrf.mxu1 }
 0x3d4   : > { %v1636_v16 = vpop.f32.mrf.mxu1 }
 0x3dc   : > { %v1638_v49 = vpop.f32.mrf.mxu1 }
 0x3e4   : > { %v1641_v30 = vpop.f32.mrf.mxu1 }
 0x3ec   : > { %v1643_v7 = vpop.f32.mrf.mxu1 }
 0x400   : > { %v1398_v44 = vpop.f32.mrf.mxu3 }
 0x401   : > { %v1418_v20 = vadd.f32 %v1398_v44, %v3073_v9 }
 0x403   : > { %v1651_v63 = vadd.f32 %v1631_v8, %v1418_v20 }
 0x405   : > { %v1699_v12 = vadd.f32 %v1662_v59, %v1651_v63 }
 0x407   : > { %v1707_v29 = vmul.f32 0.2, %v1699_v12 }
 0x408   : > { %v1400_v24 = vpop.f32.mrf.mxu3 }
 0x409   : > { %v1419_v15 = vadd.f32 %v1400_v24, %v3075_v48  ;;  %v1715_v40 = vmax.f32 %v1699_v12, %v1707_v29  ;;  %v1687_v48 = vpop.permute.xlu1 %1686 }
 0x40b   : > { %v1652_v19 = vadd.f32 %v1633_v50, %v1419_v15  ;;  %v1764_v52 = vmul.f32 %v1727_v37, %v1715_v40  ;;  %v1697_v50 = vpop.permute.xlu2 %1696 }
 0x40d   : > { %v1700_v57 = vadd.f32 %v1667_v11, %v1652_v19 }
 0x40f   : > { %v1708_v47 = vmul.f32 0.2, %v1700_v57 }
 0x410   : > { %v1403_v33 = vpop.f32.mrf.mxu3 }
 0x411   : > { %v1716_v34 = vmax.f32 %v1700_v57, %v1708_v47  ;;  %v1420_v9 = vadd.f32 %v1403_v33, %v3078_v42  ;;  %v1742_v18 = vpop.permute.xlu1 %1741 }
 0x413   : > { %v1765_v31 = vmul.f32 %v1732_v23, %v1716_v34  ;;  %v1653_v35 = vadd.f32 %v1636_v16, %v1420_v9  ;;  %v1762_v23 = vpop.permute.xlu0 %1761 }
 0x415   : > { %v1772_v2 = vadd.f32 %v1765_v31, %v1764_v52  ;;  %v1701_v22 = vadd.f32 %v1672_v45, %v1653_v35 }
 0x417   : > { %v1709_v10 = vmul.f32 0.2, %v1701_v22 }
 0x418   : > { %v1405_v43 = vpop.f32.mrf.mxu3 }
 0x419   : > { %v1717_v27 = vmax.f32 %v1701_v22, %v1709_v10  ;;  %v1421_v28 = vadd.f32 %v1405_v43, %v3080_v3  ;;  %v1752_v45 = vpop.permute.xlu1 %1751 }
 0x41b   : > { %v1766_v54 = vmul.f32 %v1737_v58, %v1717_v27  ;;  %v1654_v4 = vadd.f32 %v1638_v49, %v1421_v28 }
 0x41d   : > { %v1773_v39 = vadd.f32 %v1772_v2, %v1766_v54  ;;  %v1702_v38 = vadd.f32 %v1677_v1, %v1654_v4 }
 0x41f   : > { %v1710_v42 = vmul.f32 0.2, %v1702_v38 }
 0x420   : > { %v1408_v56 = vpop.f32.mrf.mxu3 }
 0x421   : > { %v1718_v0 = vmax.f32 %v1702_v38, %v1710_v42  ;;  %v1422_v46 = vadd.f32 %v1408_v56, %v3083_v53  ;;  %v1646_v53 = vpop.f32.mrf.mxu1 }
 0x423   : > { %v1767_v61 = vmul.f32 %v1742_v18, %v1718_v0  ;;  %v1655_v21 = vadd.f32 %v1641_v30, %v1422_v46 }
 0x425   : > { %v1774_v26 = vadd.f32 %v1773_v39, %v1767_v61  ;;  %v1703_v41 = vadd.f32 %v1682_v32, %v1655_v21  ;;  %v1757_v32 = vpop.permute.xlu2 %1756 }
 0x427   : > { %v1711_v36 = vmul.f32 0.2, %v1703_v41 }
 0x428   : > { %v1410_v3 = vpop.f32.mrf.mxu3 }
 0x429   : > { %v1719_v6 = vmax.f32 %v1703_v41, %v1711_v36  ;;  %v1423_v25 = vadd.f32 %v1410_v3, %v3085_v55  ;;  %v1191_v55 = vadd.f32 %v3138_v14, %v3090_v13  ;;  %v1648_v40 = vpop.f32.mrf.mxu1  ;;  %v1723_v14 = vld [vmem:[#allocation2] sm:$0x1] }
 0x42b   : > { %v1768_v51 = vmul.f32 %v1747_v60, %v1719_v6  ;;  %v1656_v62 = vadd.f32 %v1643_v7, %v1423_v25 }
 0x42d   : > { %v1775_v8 = vadd.f32 %v1774_v26, %v1768_v51  ;;  %v1704_v59 = vadd.f32 %v1687_v48, %v1656_v62 }
 0x42f   : > { %v1712_v44 = vmul.f32 0.2, %v1704_v59 }
 0x430   : > { %v1413_v20 = vpop.f32.mrf.mxu3 }
 0x431   : > { %v1720_v63 = vmax.f32 %v1704_v59, %v1712_v44  ;;  %v1424_v11 = vadd.f32 %v1413_v20, %v3088_v17 }
 0x433   : > { %v1769_v1 = vmul.f32 %v1752_v45, %v1720_v63  ;;  %v1657_v12 = vadd.f32 %v1646_v53, %v1424_v11 }
 0x435   : > { %v1776_v24 = vadd.f32 %v1775_v8, %v1769_v1  ;;  %v1705_v16 = vadd.f32 %v1692_v5, %v1657_v12 }
 0x437   : > { %v1713_v15 = vmul.f32 0.2, %v1705_v16 }
 0x438   : > { %v1415_v29 = vpop.f32.mrf.mxu3 }
 0x439   : > { %v1721_v19 = vmax.f32 %v1705_v16, %v1713_v15  ;;  %v1425_v57 = vadd.f32 %v1415_v29, %v1191_v55 }
 0x43b   : > { %v1770_v47 = vmul.f32 %v1757_v32, %v1721_v19  ;;  %v1658_v37 = vadd.f32 %v1648_v40, %v1425_v57 }
 0x43d   : > { %v1777_v33 = vadd.f32 %v1776_v24, %v1770_v47  ;;  %v1706_v34 = vadd.f32 %v1697_v50, %v1658_v37 }
 0x43f   : > { %v1714_v9 = vmul.f32 0.2, %v1706_v34 }
 0x441   : > { %v1722_v17 = vmax.f32 %v1706_v34, %v1714_v9 }
 0x443   : > { %v1771_v49 = vmul.f32 %v1762_v23, %v1722_v17 }
 0x445   : > { %v1778_v52 = vadd.f32 %v1777_v33, %v1771_v49 }
 0x447   : > { %v1779_v31 = vrot.slane %v1778_v52, 4 }
 0x449   : > { %v1780_v35 = vadd.f32 %v1779_v31, %v1778_v52 }
 0x44b   : > { %v1781_v2 = vrot.slane %v1780_v35, 2 }
 0x44d   : > { %v1782_v22 = vadd.f32 %v1781_v2, %v1780_v35 }
 0x44f   : > { %v1783_v13 = vrot.slane %v1782_v22, 1 }
 0x451   : > { %v1784_v10 = vadd.f32 %v1783_v13, %v1782_v22  ;;  %1790 = sbr.rel (%p1992_p6) target bundleno = 1127 (0x467), region = 64 }
 0x453   : > { %v1785_v48 = vadd.f32 %v1784_v10, %v1723_v14 }
 0x455   : > { %1786 = vst [vmem:[#allocation2] sm:$0x1] %v1785_v48 }
 0x456   : > { %v1792_v27 = vstv %s2179_s20 }
 0x45c   : > { %v1791_v43 = vld [vmem:[#allocation2] sm:$0x1] }
 0x45d   : > { %v1793_v28 = vadd.f32 %v1792_v27, %v1791_v43 }
 0x45f   : > { %2062 = vtanh.f32 %v1793_v28 }
 0x465   : > { %v2063_v58 = vpop.eup %2062 }
 0x466   : > { %1795 = vst [vmem:[%s3172_s9] sm:$0x1] %v2063_v58 }
 0x467 PF: > { %s20_s13 = sadd.s32 1, %s2086_s13   ;;  %s3230_s11 = smov %s2082_s12 }
 0x468   : > { %p17_p7 = scmp.ge.s32.totalorder %s20_s13, 6   ;;  %s3231_s12 = smov %s3233_s8 }
 0x46a   :  { %19 = sbr.rel (!%p17_p7) target bundleno = 2 (0x2), region = 100 }

</bundles_post_ra>
